<compile_context>
chip_gen: v5e
topology: v5e:2x2
jax: 0.10.0
libtpu: 0.0.40
codegen_flags: <defaults>
</compile_context>

<pallas_src>
import math

import jax
import jax.numpy as jnp
from jax.experimental import pallas as pl
from jax.experimental.pallas import tpu as pltpu


def _round_up(a, b):
    return (a + b - 1) // b * b


def _lane_round(n):
    # v6e/v7x MXUs are 2x256x256 -> prefer 256-aligned K/N slabs for large dims.
    # 256 is also a multiple of 128, so this stays legal (and harmless) on v5e.
    return _round_up(n, 256) if n >= 256 else _round_up(n, 128)


def _vmem_budget_bytes():
    """Generation-aware VMEM budget (~3/4 of capacity: 96 MiB on v5e/v6e, 48 MiB on v7x)."""
    cap = 128 * 1024 * 1024
    try:
        cap = int(pltpu.get_tpu_info().vmem_capacity_bytes)
    except Exception:  # fallback when the query is unavailable (e.g. interpret mode)
        pass
    return max((cap * 3) // 4, 24 * 1024 * 1024)


# ---------------------------------------------------------------------------
# Kernel 1: LorentzLinear (matmul + Lorentz projection, fused)
# ---------------------------------------------------------------------------
def _lorentz_linear_kernel(s_ref, x_ref, w_ref, b_ref, o_ref):
    # s_ref: (1,1) SMEM holding exp(log_scale) (precomputed in the wrapper).
    # x_ref: (tm, Kp) bf16; w_ref: (Kp, Np) bf16; b_ref: (1, Np) f32.
    y = jnp.dot(x_ref[...], w_ref[...],
                preferred_element_type=jnp.float32) + b_ref[...]          # (tm, Np) f32

    col = jax.lax.broadcasted_iota(jnp.int32, y.shape, dimension=1)
    y0 = y[:, 0:1]                                                        # (tm, 1)
    time = jax.nn.sigmoid(y0) * s_ref[0, 0] + 1.1                         # (tm, 1)

    # ||narrow||^2 without cancellation: mask lane 0, sum squares (padded lanes are 0).
    narrow_sq = jnp.maximum(
        jnp.sum(jnp.where(col == 0, 0.0, y) ** 2, axis=-1, keepdims=True), 1e-8)
    coef = jnp.sqrt(time * time - 1.0) * jax.lax.rsqrt(narrow_sq)         # (tm, 1) EUP ops

    out = jnp.where(col == 0, time, y * coef)                             # lane-dense slab
    o_ref[...] = out.astype(o_ref.dtype)


def _fit_linear_rows(tm, kp, np_, out_bytes, budget):
    """Shrink the row tile until the (double-buffered) working set fits the VMEM budget."""
    headroom = 2 * 1024 * 1024  # semaphores / internal scratch

    def est(t):
        return (2 * t * kp * 2          # x tiles (bf16, double buffered)
                + 2 * t * np_ * out_bytes   # output tiles (double buffered)
                + 2 * kp * np_ * 2      # W (grid-invariant but double buffered by default)
                + 2 * np_ * 4)          # bias

    while tm > 128 and est(tm) + headroom > budget:
        tm = max(128, (tm // 2) // 128 * 128)
    # TODO(synk): add a K-reduction grid axis when 2*kp*np_*2 alone approaches the budget
    #             (very large feature dims on v7x's 64 MiB VMEM).
    return tm


def _lorentz_linear_padded(x, weight, bias, log_scale, *, tm=1024, out_dtype=jnp.float32):
    """Returns the padded (mp, np_) result plus (M, out_features)."""
    in_features = x.shape[-1]
    out_features = weight.shape[0]
    lead = x.shape[:-1]
    M = math.prod(lead) if lead else 1                    # static under jit
    budget = _vmem_budget_bytes()

    kp = _lane_round(in_features)                         # lane-dense K
    np_ = _lane_round(out_features)                       # lane-dense N (unmasked stores)
    out_bytes = jnp.dtype(out_dtype).itemsize

    tm = max(128, tm // 128 * 128)
    tm_eff = min(tm, _round_up(M, 128))
    if M > 128:                                           # >=2 row tiles so both v7x TCs get work
        tm_eff = min(tm_eff, _round_up(pl.cdiv(M, 2), 128))
    tm_eff = _fit_linear_rows(tm_eff, kp, np_, out_bytes, budget)
    mp = _round_up(M, tm_eff)

    # Cast to bf16 *before* padding (avoids the f32 intermediates on the wrapper side).
    # For repeated inference, w_t / b2d / s2d should be precomputed once outside this call.
    x2d = jnp.pad(x.reshape(M, in_features).astype(jnp.bfloat16),
                  ((0, mp - M), (0, kp - in_features)))
    w_t = jnp.pad(weight.astype(jnp.bfloat16).T,
                  ((0, kp - in_features), (0, np_ - out_features)))
    b2d = jnp.pad(bias.astype(jnp.float32).reshape(1, out_features),
                  ((0, 0), (0, np_ - out_features)))
    s2d = jnp.exp(jnp.asarray(log_scale, jnp.float32)).reshape(1, 1)

    out = pl.pallas_call(
        _lorentz_linear_kernel,
        out_shape=jax.ShapeDtypeStruct((mp, np_), out_dtype),
        grid_spec=pltpu.PrefetchScalarGridSpec(
            num_scalar_prefetch=0,
            grid=(mp // tm_eff,),
            in_specs=[
                pl.BlockSpec(memory_space=pltpu.MemorySpace.SMEM),   # exp(log_scale)
                pl.BlockSpec((tm_eff, kp), lambda i: (i, 0)),
                pl.BlockSpec((kp, np_), lambda i: (0, 0)),
                pl.BlockSpec((1, np_), lambda i: (0, 0)),
            ],
            out_specs=pl.BlockSpec((tm_eff, np_), lambda i: (i, 0)),
        ),
        compiler_params=pltpu.CompilerParams(
            dimension_semantics=("parallel",),
            vmem_limit_bytes=budget,
        ),
    )(s2d, x2d, w_t, b2d)
    return out, M, out_features


def lorentz_linear(x, weight, bias, log_scale, *, tm=1024, out_dtype=jnp.float32):
    """x: (..., in_features); weight: (out, in); bias: (out,); log_scale: scalar."""
    lead = x.shape[:-1]
    out_p, M, out_features = _lorentz_linear_padded(
        x, weight, bias, log_scale, tm=tm, out_dtype=out_dtype)
    return out_p[:M, :out_features].reshape(*lead, out_features)


# ---------------------------------------------------------------------------
# Kernel 2: LorentzAgg (adj @ h + Lorentz normalization, use_att=False path)
# ---------------------------------------------------------------------------
def _lorentz_agg_kernel(adj_ref, h_ref, o_ref):
    k = pl.program_id(1)

    @pl.when(k == 0)
    def _():
        o_ref[...] = jnp.zeros_like(o_ref)

    # Accumulate directly into the VMEM-resident f32 output block (bf16 MXU operands).
    o_ref[...] += jnp.dot(adj_ref[...], h_ref[...], preferred_element_type=jnp.float32)

    @pl.when(k == pl.num_programs(1) - 1)
    def _():
        s = o_ref[...]                                       # (tr, Fp) f32
        col = jax.lax.broadcasted_iota(jnp.int32, s.shape, dimension=1)
        s0 = s[:, 0:1]
        spatial = jnp.sum(jnp.where(col == 0, 0.0, s) ** 2, axis=-1, keepdims=True)
        denorm_sq = jnp.maximum(jnp.abs(s0 * s0 - spatial), 1e-8)
        o_ref[...] = s * jax.lax.rsqrt(denorm_sq)


def _lorentz_agg_padded(adj, h_p, n_nodes, f_valid, *, tr=1024, tk=1024):
    """adj: (n_nodes, n_nodes); h_p: (kp, fp) bf16 with kp >= n_nodes padded rows.

    Padded h rows carry arbitrary finite values; they are killed by the zero-padded
    adjacency columns, so no re-slicing/re-padding of h is needed.
    """
    kp, fp = h_p.shape
    budget = _vmem_budget_bytes()

    tr = max(128, tr // 128 * 128)
    tk = max(128, tk // 128 * 128)

    tr_eff = min(tr, _round_up(n_nodes, 128))
    if n_nodes > 128:                                        # >=2 row tiles for the 2 v7x TCs
        tr_eff = min(tr_eff, _round_up(pl.cdiv(n_nodes, 2), 128))
    tk_eff = math.gcd(min(tk, kp), kp)                       # multiple of 128 dividing kp

    headroom = 2 * 1024 * 1024

    def est(r, k):
        return 2 * r * k * 2 + 2 * k * fp * 2 + 2 * r * fp * 4

    while est(tr_eff, tk_eff) + headroom > budget and (tr_eff > 128 or tk_eff > 128):
        if tr_eff >= tk_eff and tr_eff > 128:
            tr_eff = max(128, (tr_eff // 2) // 128 * 128)
        elif tk_eff > 128:
            tk_eff = 128                                     # 128 always divides kp
        else:
            break

    rp = _round_up(n_nodes, tr_eff)
    adj_p = jnp.pad(adj.astype(jnp.bfloat16),
                    ((0, rp - n_nodes), (0, kp - n_nodes)))

    out = pl.pallas_call(
        _lorentz_agg_kernel,
        out_shape=jax.ShapeDtypeStruct((rp, fp), jnp.float32),
        grid_spec=pltpu.PrefetchScalarGridSpec(
            num_scalar_prefetch=0,
            grid=(rp // tr_eff, kp // tk_eff),
            in_specs=[
                pl.BlockSpec((tr_eff, tk_eff), lambda i, k: (i, k)),
                pl.BlockSpec((tk_eff, fp), lambda i, k: (k, 0)),
            ],
            out_specs=pl.BlockSpec((tr_eff, fp), lambda i, k: (i, 0)),
        ),
        compiler_params=pltpu.CompilerParams(
            dimension_semantics=("parallel", "arbitrary"),
            vmem_limit_bytes=budget,
        ),
    )(adj_p, h_p)
    return out[:n_nodes, :f_valid]


def lorentz_agg(h, adj, *, tr=1024, tk=1024):
    """h: (N, F) hyperboloid features; adj: (N, N) dense adjacency."""
    N, F = h.shape
    fp = _lane_round(F)
    kp = _round_up(N, 128)
    h_p = jnp.pad(h.astype(jnp.bfloat16), ((0, kp - N), (0, fp - F)))
    return _lorentz_agg_padded(adj, h_p, N, F, tr=tr, tk=tk)


def lorentz_graph_convolution(x, adj, weight, bias, log_scale, *, use_att=False):
    if use_att:
        # TODO(synk): attention aggregation (use_att=True) is not implemented; only adj @ h is fused.
        raise NotImplementedError("use_att=True aggregation path not implemented")
    # TODO(synk): dropout inside LorentzLinear is modeled as identity (inference mode).
    # Fused path: h stays padded & bf16 straight from kernel 1 into the agg kernel
    # (no f32 writeback, no slice, no re-pad HBM round trips).
    h_p, M, out_features = _lorentz_linear_padded(
        x, weight, bias, log_scale, out_dtype=jnp.bfloat16)
    assert adj.shape[-1] == M, "adjacency size must match the number of nodes"
    return _lorentz_agg_padded(adj, h_p, M, out_features)


# ---------------------------------------------------------------------------
# Parameter init (matches LorentzLinear.reset_parameters) and pure-JAX reference
# ---------------------------------------------------------------------------
def init_params(key, in_features, out_features, scale=10.0):
    stdv = 1.0 / math.sqrt(out_features)
    weight = jax.random.uniform(key, (out_features, in_features), jnp.float32, -stdv, stdv)
    weight = weight.at[:, 0].set(0.0)      # step == in_features -> only column 0 zeroed
    bias = jnp.zeros((out_features,), jnp.float32)
    log_scale = jnp.asarray(math.log(scale), jnp.float32)
    return weight, bias, log_scale


def reference_linear(x, weight, bias, log_scale, matmul_dtype=jnp.float32):
    y = jnp.dot(x.astype(matmul_dtype), weight.T.astype(matmul_dtype),
                preferred_element_type=jnp.float32) + bias
    time = jax.nn.sigmoid(y[..., 0:1]) * jnp.exp(log_scale) + 1.1
    narrow = y[..., 1:]
    denom = jnp.maximum(jnp.sum(narrow * narrow, -1, keepdims=True), 1e-8)
    scale = (time * time - 1.0) / denom
    return jnp.concatenate([time, narrow * jnp.sqrt(scale)], -1)


def reference_graph_conv(x, adj, weight, bias, log_scale,
                         matmul_dtype=jnp.float32, agg_dtype=jnp.float32):
    h = reference_linear(x, weight, bias, log_scale, matmul_dtype).astype(agg_dtype)
    support = jnp.dot(adj.astype(agg_dtype), h, preferred_element_type=jnp.float32)
    s0 = support[..., 0:1]
    spatial = jnp.sum(support[..., 1:] ** 2, -1, keepdims=True)
    denorm = jnp.sqrt(jnp.maximum(jnp.abs(s0 * s0 - spatial), 1e-8))
    return support / denorm


if __name__ == "__main__":
    num_nodes, in_features, out_features = 16, 32, 32

    key = jax.random.PRNGKey(0)
    k_x, k_w, k_a = jax.random.split(key, 3)

    x = jax.random.normal(k_x, (num_nodes, in_features), jnp.float32)
    weight, bias, log_scale = init_params(k_w, in_features, out_features)

    adj = (jax.random.uniform(k_a, (num_nodes, num_nodes)) < 0.3).astype(jnp.float32)
    adj = jnp.maximum(adj, adj.T) + jnp.eye(num_nodes, dtype=jnp.float32)
    adj = adj / jnp.sum(adj, axis=-1, keepdims=True)

    h = lorentz_linear(x, weight, bias, log_scale)                    # f32 standalone path
    out = lorentz_graph_convolution(x, adj, weight, bias, log_scale)  # fused bf16 path
    out = jax.block_until_ready(out)

    # References use the same bf16 matmul operands as the kernels.
    h_ref = reference_linear(x, weight, bias, log_scale, matmul_dtype=jnp.bfloat16)
    ref = reference_graph_conv(x, adj, weight, bias, log_scale,
                               matmul_dtype=jnp.bfloat16, agg_dtype=jnp.bfloat16)

    assert out.shape == (num_nodes, out_features)
    assert jnp.allclose(h, h_ref, atol=2e-3, rtol=2e-3), "LorentzLinear mismatch vs reference"
    # bf16 h/adj in the fused path -> slightly looser tolerance (bf16 has ~0.4% precision).
    assert jnp.allclose(out, ref, atol=1e-2, rtol=1e-2), "LorentzGraphConvolution mismatch vs reference"

    print("KERNEL_OK")
</pallas_src>

<mosaic_0001>
module attributes {stable_mosaic.version = 11 : i64} {
  func.func @_lorentz_linear_kernel(%arg0: i32, %arg1: memref<1x1xf32, #tpu.memory_space<smem>>, %arg2: memref<128x128xbf16, #tpu.memory_space<vmem>>, %arg3: memref<128x128xbf16, #tpu.memory_space<vmem>>, %arg4: memref<1x128xf32, #tpu.memory_space<vmem>>, %arg5: memref<128x128xf32, #tpu.memory_space<vmem>>) attributes {dimension_semantics = [#tpu.dimension_semantics<parallel>], iteration_bounds = array<i64: 1>, scalar_prefetch = 0 : i64, scratch_operands = 0 : i64, tpu.core_type = #tpu.core_type<tc>, window_params = [{transform_indices = @transform_0, window_bounds = array<i64: 1, 1>}, {transform_indices = @transform_1, window_bounds = array<i64: 128, 128>}, {pipeline_mode = #tpu.pipeline_mode<synchronous>, transform_indices = @transform_2, window_bounds = array<i64: 128, 128>}, {pipeline_mode = #tpu.pipeline_mode<synchronous>, transform_indices = @transform_3, window_bounds = array<i64: 1, 128>}, {transform_indices = @transform_4, window_bounds = array<i64: 128, 128>}]} {
    %c0 = arith.constant 0 : index
    %c0_0 = arith.constant 0 : index
    %0 = vector.load %arg2[%c0, %c0_0] : memref<128x128xbf16, #tpu.memory_space<vmem>>, vector<128x128xbf16>
    %c0_1 = arith.constant 0 : index
    %c0_2 = arith.constant 0 : index
    %1 = vector.load %arg3[%c0_1, %c0_2] : memref<128x128xbf16, #tpu.memory_space<vmem>>, vector<128x128xbf16>
    %cst = arith.constant dense<0.000000e+00> : vector<128x128xf32>
    %2 = tpu.matmul %0, %1, %cst {dimension_numbers = #tpu.dot_dimension_numbers<[1], [0], [0], [1], [0, 0, 1, 1], [], []>} : vector<128x128xbf16>, vector<128x128xbf16>, vector<128x128xf32> -> vector<128x128xf32>
    %c0_3 = arith.constant 0 : index
    %c0_4 = arith.constant 0 : index
    %3 = vector.load %arg4[%c0_3, %c0_4] : memref<1x128xf32, #tpu.memory_space<vmem>>, vector<1x128xf32>
    %4 = vector.broadcast %3 : vector<1x128xf32> to vector<128x128xf32>
    %5 = arith.addf %2, %4 : vector<128x128xf32>
    %6 = tpu.iota {dimensions = array<i32: 1>} : vector<128x128xi32>
    %7 = vector.extract_strided_slice %5 {offsets = [0, 0], sizes = [128, 1], strides = [1, 1]} : vector<128x128xf32> to vector<128x1xf32>
    %8 = arith.negf %7 : vector<128x1xf32>
    %9 = math.exp %8 : vector<128x1xf32>
    %cst_5 = arith.constant 1.000000e+00 : f32
    %10 = vector.broadcast %cst_5 : f32 to vector<128x1xf32>
    %11 = arith.addf %10, %9 : vector<128x1xf32>
    %12 = arith.divf %10, %11 : vector<128x1xf32>
    %c0_6 = arith.constant 0 : index
    %c0_7 = arith.constant 0 : index
    %13 = memref.load %arg1[%c0_6, %c0_7] : memref<1x1xf32, #tpu.memory_space<smem>>
    %14 = vector.broadcast %13 : f32 to vector<128x1xf32>
    %15 = arith.mulf %12, %14 : vector<128x1xf32>
    %cst_8 = arith.constant 1.100000e+00 : f32
    %16 = vector.broadcast %cst_8 : f32 to vector<128x1xf32>
    %17 = arith.addf %15, %16 : vector<128x1xf32>
    %c0_i32 = arith.constant 0 : i32
    %18 = vector.broadcast %c0_i32 : i32 to vector<128x128xi32>
    %19 = arith.cmpi eq, %6, %18 : vector<128x128xi32>
    %cst_9 = arith.constant 0.000000e+00 : f32
    %20 = vector.broadcast %cst_9 : f32 to vector<128x128xf32>
    %21 = arith.select %19, %20, %5 : vector<128x128xi1>, vector<128x128xf32>
    %22 = arith.mulf %21, %21 : vector<128x128xf32>
    %cst_10 = arith.constant dense<0.000000e+00> : vector<128xf32>
    %23 = vector.multi_reduction <add>, %22, %cst_10 [1] : vector<128x128xf32> to vector<128xf32>
    %24 = vector.shape_cast %23 : vector<128xf32> to vector<128x1xf32>
    %cst_11 = arith.constant 9.99999993E-9 : f32
    %25 = vector.broadcast %cst_11 : f32 to vector<128x1xf32>
    %26 = arith.maximumf %24, %25 : vector<128x1xf32>
    %27 = arith.mulf %17, %17 : vector<128x1xf32>
    %cst_12 = arith.constant 1.000000e+00 : f32
    %28 = vector.broadcast %cst_12 : f32 to vector<128x1xf32>
    %29 = arith.subf %27, %28 : vector<128x1xf32>
    %30 = math.sqrt %29 : vector<128x1xf32>
    %31 = math.rsqrt %26 : vector<128x1xf32>
    %32 = arith.mulf %30, %31 : vector<128x1xf32>
    %c0_i32_13 = arith.constant 0 : i32
    %33 = vector.broadcast %c0_i32_13 : i32 to vector<128x128xi32>
    %34 = arith.cmpi eq, %6, %33 : vector<128x128xi32>
    %35 = vector.broadcast %32 : vector<128x1xf32> to vector<128x128xf32>
    %36 = arith.mulf %5, %35 : vector<128x128xf32>
    %37 = vector.shape_cast %17 : vector<128x1xf32> to vector<128x1xf32>
    %38 = vector.broadcast %37 : vector<128x1xf32> to vector<128x128xf32>
    %39 = arith.select %34, %38, %36 : vector<128x128xi1>, vector<128x128xf32>
    %c0_14 = arith.constant 0 : index
    %c0_15 = arith.constant 0 : index
    %40 = vector.load %arg5[%c0_14, %c0_15] : memref<128x128xf32, #tpu.memory_space<vmem>>, vector<128x128xf32>
    tpu.vector_store %arg5[%c0_14, %c0_15], %39 {strides = array<i32>} : memref<128x128xf32, #tpu.memory_space<vmem>>, vector<128x128xf32>,
    return
  }
  func.func @transform_0(%arg0: i32) -> (i32, i32) {
    %c0_i32 = arith.constant 0 : i32
    %c0_i32_0 = arith.constant 0 : i32
    %c0_i32_1 = arith.constant 0 : i32
    return %c0_i32, %c0_i32_0 : i32, i32
  }
  func.func @transform_1(%arg0: i32) -> (i32, i32) {
    %c0_i32 = arith.constant 0 : i32
    %c0_i32_0 = arith.constant 0 : i32
    return %arg0, %c0_i32 : i32, i32
  }
  func.func @transform_2(%arg0: i32) -> (i32, i32) {
    %c0_i32 = arith.constant 0 : i32
    %c0_i32_0 = arith.constant 0 : i32
    %c0_i32_1 = arith.constant 0 : i32
    return %c0_i32, %c0_i32_0 : i32, i32
  }
  func.func @transform_3(%arg0: i32) -> (i32, i32) {
    %c0_i32 = arith.constant 0 : i32
    %c0_i32_0 = arith.constant 0 : i32
    %c0_i32_1 = arith.constant 0 : i32
    return %c0_i32, %c0_i32_0 : i32, i32
  }
  func.func @transform_4(%arg0: i32) -> (i32, i32) {
    %c0_i32 = arith.constant 0 : i32
    %c0_i32_0 = arith.constant 0 : i32
    return %arg0, %c0_i32 : i32, i32
  }
}

</mosaic_0001>

<bundles_post_ra>
// kernel: tpu_custom_call.1
= control target key start
LH: loop header
LB: loop body
LE: loop exit
PB: predicated region body
PF: predicated region fallthrough
CT: control target
= control target key end

     0   :  { %10 = vsyncpa [#allocation4], 0  ;;  %s2914_s0 = inlined_call_operand.<no memory space> [shape: f32[1,1], index: 0, kind: input, shape index: {}]   ;;  %s2915_s1 = inlined_call_operand.hbm [shape: bf16[128,128], index: 1, kind: input, shape index: {}]   ;;  %s2916_s2 = inlined_call_operand.hbm [shape: bf16[128,128], index: 2, kind: input, shape index: {}]   ;;  %s2917_s3 = inlined_call_operand.vmem [shape: f32[1,128], index: 3, kind: input, shape index: {}]   ;;  %s2918_s4 = inlined_call_operand.hbm [shape: f32[128,128], index: 4, kind: output, shape index: {}]  }
   0x1   :  { %11 = vsyncpa [#allocation7], 0 }
   0x2   :  { %12 = vsyncpa [#allocation5], 0  ;;  %s19_s17 = sshll.u32 %s2915_s1, 4  ;;  %s1635_s18 = smov [#allocation3]   ;;  %s20_s17 = int_to_ptr.hbm [resolvable:$true] %s19_s17 }
   0x3   :  { %s21_s19 = sshll.u32 %s1635_s18, 4  ;;  %s32_s22 = sshll.u32 %s2916_s2, 4  ;;  %s22_s19 = int_to_ptr.vmem [resolvable:$true] %s21_s19  ;;  %s33_s22 = int_to_ptr.hbm [resolvable:$true] %s32_s22 }
   0x4   :  { %s1636_s23 = smov 64   ;;  %s1637_s24 = smov 4  }
   0x5   :  { %27 = dma.hbm_to_vmem [thread:$0]  %s20_s17, 1024, %s22_s19, [#allocation4], %s1636_s23, %s1636_s23, %s1637_s24  }
   0x6   :  { %s1638_s25 = smov [#allocation6]  }
   0x7   :  { %s34_s26 = sshll.u32 %s1638_s25, 4  ;;  %s35_s26 = int_to_ptr.vmem [resolvable:$true] %s34_s26 }
   0x8   :  { %40 = dma.hbm_to_vmem [thread:$0]  %s33_s22, 1024, %s35_s26, [#allocation7], %s1636_s23, %s1636_s23, %s1637_s24  }
   0x9   :  { %1629 = dma.done.wait [#allocation4], 1024  }
   0xa   :  { %1630 = vsyncadd [#allocation4], 4294966272 }
   0xb   :  { %1631 = dma.done.wait [#allocation7], 1024  }
   0xc   :  { %1632 = vsyncadd [#allocation7], 4294966272  ;;  %v1392_v0 = vld [vmem:[#allocation6 + $0x38] sm:$0xff]  ;;  %v1391_v1 = vld [vmem:[#allocation6 + $0x30] sm:$0xff]  ;;  %v232_v16 = vlaneseq  ;;  %s1267_s5 = sshll.u32 %s2918_s4, 4  ;;  %s1641_s6 = smov 128   ;;  %s1268_s5 = int_to_ptr.hbm [resolvable:$true] %s1267_s5 }
   0xd   :  { %183 = vmatpush.bf16.msra.mxu0 %v1392_v0  ;;  %1393 = vmatpush.bf16.msra.mxu1 %v1392_v0  ;;  %v1390_v2 = vld [vmem:[#allocation6 + $0x28] sm:$0xff]  ;;  %v1389_v3 = vld [vmem:[#allocation6 + $0x20] sm:$0xff]  ;;  %v1388_v4 = vld [vmem:[#allocation6 + $0x18] sm:$0xff]  ;;  %s1642_s7 = smov 8  }
   0xe   :  { %1394 = vmatpush.bf16.msra.mxu2 %v1392_v0  ;;  %1395 = vmatpush.bf16.msra.mxu3 %v1392_v0  ;;  %v1387_v5 = vld [vmem:[#allocation6 + $0x10] sm:$0xff]  ;;  %v1386_v6 = vld [vmem:[#allocation6 + $0x8] sm:$0xff]  ;;  %v1385_v7 = vld [vmem:[#allocation6] sm:$0xff]  ;;  %v1674_v17 = vand.u32 127, %v232_v16 }
   0xf   :  { %v1377_v8 = vld [vmem:[#allocation3] sm:$0xff]  ;;  %v1379_v9 = vld [vmem:[#allocation3 + $0x10] sm:$0xff]  ;;  %v1378_v12 = vld [vmem:[#allocation3 + $0x8] sm:$0xff] }
  0x10   :  { %v1381_v10 = vld [vmem:[#allocation3 + $0x20] sm:$0xff]  ;;  %v1383_v11 = vld [vmem:[#allocation3 + $0x30] sm:$0xff]  ;;  %v1380_v13 = vld [vmem:[#allocation3 + $0x18] sm:$0xff]  ;;  %vm572_vm0 = vcmp.eq.s32.totalorder %v1674_v17, 0 }
  0x11   :  { %184 = vmatpush.bf16.msra.mxu0 %v1391_v1  ;;  %1396 = vmatpush.bf16.msra.mxu1 %v1391_v1  ;;  %v1384_v14 = vld [vmem:[#allocation3 + $0x38] sm:$0xff]  ;;  %v1382_v15 = vld [vmem:[#allocation3 + $0x28] sm:$0xff]  ;;  %v1679_v18 = vld [vmem:[%s2917_s3] ss:$0 sm:$0xff] }
  0x12   :  { %1397 = vmatpush.bf16.msra.mxu2 %v1391_v1  ;;  %1398 = vmatpush.bf16.msra.mxu3 %v1391_v1 }
  0x15   :  { %185 = vmatpush.bf16.msra.mxu0 %v1390_v2  ;;  %1399 = vmatpush.bf16.msra.mxu1 %v1390_v2 }
  0x16   :  { %1400 = vmatpush.bf16.msra.mxu2 %v1390_v2  ;;  %1401 = vmatpush.bf16.msra.mxu3 %v1390_v2 }
  0x19   :  { %186 = vmatpush.bf16.msra.mxu0 %v1389_v3  ;;  %1402 = vmatpush.bf16.msra.mxu1 %v1389_v3 }
  0x1a   :  { %1403 = vmatpush.bf16.msra.mxu2 %v1389_v3  ;;  %1404 = vmatpush.bf16.msra.mxu3 %v1389_v3 }
  0x1d   :  { %187 = vmatpush.bf16.msra.mxu0 %v1388_v4  ;;  %1405 = vmatpush.bf16.msra.mxu1 %v1388_v4 }
  0x1e   :  { %1406 = vmatpush.bf16.msra.mxu2 %v1388_v4  ;;  %1407 = vmatpush.bf16.msra.mxu3 %v1388_v4 }
  0x21   :  { %188 = vmatpush.bf16.msra.mxu0 %v1387_v5  ;;  %1408 = vmatpush.bf16.msra.mxu1 %v1387_v5 }
  0x22   :  { %1409 = vmatpush.bf16.msra.mxu2 %v1387_v5  ;;  %1410 = vmatpush.bf16.msra.mxu3 %v1387_v5 }
  0x25   :  { %189 = vmatpush.bf16.msra.mxu0 %v1386_v6  ;;  %1411 = vmatpush.bf16.msra.mxu1 %v1386_v6 }
  0x26   :  { %1412 = vmatpush.bf16.msra.mxu2 %v1386_v6  ;;  %1413 = vmatpush.bf16.msra.mxu3 %v1386_v6 }
  0x29   :  { %190 = vmatpush.bf16.msra.mxu0 %v1385_v7  ;;  %1414 = vmatpush.bf16.msra.mxu1 %v1385_v7 }
  0x2a   :  { %1415 = vmatpush.bf16.msra.mxu2 %v1385_v7  ;;  %1416 = vmatpush.bf16.msra.mxu3 %v1385_v7 }
  0x2c   :  { %191 = vmatmul.bf16.vlgmr.msra.gmra.mxu0 %v1377_v8  ;;  %201 = vmatmul.bf16.vlgmr.msra.gmra.mxu1 %v1379_v9  ;;  %v1639_v9 = vmov 0  }
  0x2d   :  { %211 = vmatmul.bf16.vlgmr.msra.gmra.mxu2 %v1381_v10  ;;  %221 = vmatmul.bf16.vlgmr.msra.gmra.mxu3 %v1383_v11 }
  0x2e   :  { %1425 = vset.pattern.permute.xlu2 %v1639_v9  ;;  %1427 = vset.pattern.permute.xlu0 %v1639_v9 }
  0x2f   :  { %1426 = vset.pattern.permute.xlu1 %v1639_v9 }
  0x3c   :  { %196 = vmatmul.bf16.gmra.mxu0 %v1378_v12  ;;  %206 = vmatmul.bf16.gmra.mxu1 %v1380_v13 }
  0x3d   :  { %226 = vmatmul.bf16.gmra.mxu3 %v1384_v14  ;;  %216 = vmatmul.bf16.gmra.mxu2 %v1382_v15 }
  0xa9   :  { %v192_v19 = vpop.f32.mrf.mxu0  ;;  %v202_v20 = vpop.f32.mrf.mxu1 }
  0xaa   :  { %v1683_v21 = vadd.f32 %v1679_v18, %v192_v19  ;;  %v1686_v22 = vadd.f32 %v1679_v18, %v202_v20 }
  0xac   :  { %v1345_v23 = vmul.f32 -1.442695, %v1683_v21  ;;  %v577_v24 = vsel %vm572_vm0, 0.0, %v1686_v22  ;;  %v573_v25 = vsel %vm572_vm0, 0.0, %v1683_v21  ;;  %v1349_v54 = vmul.f32 -1.442695, %v1686_v22 }
  0xad   :  { %v593_v26 = vmul.f32 %v577_v24, %v577_v24  ;;  %v589_v27 = vmul.f32 %v573_v25, %v573_v25 }
  0xae   :  { %1429 = vpow2.f32 %v1345_v23 }
  0xaf   :  { %613 = vadd.xlane.f32.xlu2 %v593_v26  ;;  %605 = vadd.xlane.f32.xlu0 %v589_v27 }
  0xb0   :  { %v212_v28 = vpop.f32.mrf.mxu2  ;;  %v222_v29 = vpop.f32.mrf.mxu3 }
  0xb1   :  { %v1696_v30 = vadd.f32 %v1679_v18, %v212_v28  ;;  %v1699_v31 = vadd.f32 %v1679_v18, %v222_v29  ;;  %v194_v32 = vpop.f32.mrf.mxu0  ;;  %v204_v34 = vpop.f32.mrf.mxu1 }
  0xb2   :  { %v1711_v41 = vadd.f32 %v1679_v18, %v194_v32  ;;  %v1714_v42 = vadd.f32 %v1679_v18, %v204_v34 }
  0xb3   :  { %v1353_v33 = vmul.f32 -1.442695, %v1696_v30  ;;  %v581_v35 = vsel %vm572_vm0, 0.0, %v1696_v30  ;;  %v585_v36 = vsel %vm572_vm0, 0.0, %v1699_v31  ;;  %v1357_v56 = vmul.f32 -1.442695, %v1699_v31 }
  0xb4   :  { %v1430_v37 = vpop.eup %1429  ;;  %v597_v38 = vmul.f32 %v581_v35, %v581_v35  ;;  %v601_v39 = vmul.f32 %v585_v36, %v585_v36  ;;  %v574_v45 = vsel %vm572_vm0, 0.0, %v1711_v41  ;;  %v1350_v48 = vmul.f32 -1.442695, %v1714_v42 }
  0xb5   :  { %v1708_v40 = vadd.f32 1.0, %v1430_v37  ;;  %1431 = vpow2.f32 %v1353_v33  ;;  %v578_v49 = vsel %vm572_vm0, 0.0, %v1714_v42  ;;  %v590_v52 = vmul.f32 %v574_v45, %v574_v45 }
  0xb6   :  { %v594_v57 = vmul.f32 %v578_v49, %v578_v49  ;;  %v1346_v1 = vmul.f32 -1.442695, %v1711_v41 }
  0xb7   :  { %621 = vadd.xlane.f32.xlu2 %v597_v38  ;;  %629 = vadd.xlane.f32.xlu0 %v601_v39  ;;  %1433 = vrcp.f32 %v1708_v40  ;;  %vm303_vm1 = vweird.f32 %v1708_v40  ;;  %v309_v49 = vand.u32 2147483648, %v1708_v40 }
  0xb8   :  { %v214_v43 = vpop.f32.mrf.mxu2  ;;  %v224_v44 = vpop.f32.mrf.mxu3  ;;  %1435 = vpow2.f32 %v1350_v48 }
  0xb9   :  { %v1720_v46 = vadd.f32 %v1679_v18, %v224_v44  ;;  %v197_v47 = vpop.f32.mrf.mxu0  ;;  %v1736_v58 = vadd.f32 %v1679_v18, %v214_v43  ;;  %v207_v61 = vpop.f32.mrf.mxu1  ;;  %1437 = vpow2.f32 %v1349_v54 }
  0xba   :  { %v1731_v51 = vadd.f32 %v1679_v18, %v197_v47  ;;  %1439 = vpow2.f32 %v1357_v56  ;;  %v1754_v6 = vadd.f32 %v1679_v18, %v207_v61 }
  0xbb   :  { %2927 = vst [vmem:[#allocation12_spill] sm:$0xff] %v1720_v46  ;;  %v586_v50 = vsel %vm572_vm0, 0.0, %v1720_v46  ;;  %v1432_v53 = vpop.eup %1431  ;;  %v1358_v2 = vmul.f32 -1.442695, %v1720_v46  ;;  %v582_v5 = vsel %vm572_vm0, 0.0, %v1736_v58 }
  0xbc   :  { %2928 = vst [vmem:[#allocation13_spill] sm:$0xff] %v1731_v51  ;;  %v602_v55 = vmul.f32 %v586_v50, %v586_v50  ;;  %v1738_v59 = vadd.f32 1.0, %v1432_v53  ;;  %v575_v60 = vsel %vm572_vm0, 0.0, %v1731_v51  ;;  %v598_v14 = vmul.f32 %v582_v5, %v582_v5 }
  0xbd   :  { %v1743_v62 = vpop.eup %1433  ;;  %v591_v4 = vmul.f32 %v575_v60, %v575_v60  ;;  %2930 = vst [vmem:[#allocation15_spill] sm:$0xff] %v1754_v6  ;;  %v579_v23 = vsel %vm572_vm0, 0.0, %v1754_v6  ;;  %v1354_v25 = vmul.f32 -1.442695, %v1736_v58  ;;  %v1347_v32 = vmul.f32 -1.442695, %v1731_v51 }
  0xbe   :  { %631 = vadd.xlane.f32.xlu1 %v602_v55  ;;  %1441 = vrcp.f32 %v1738_v59  ;;  %v299_v10 = vmul.f32 %v1743_v62, %v1708_v40  ;;  %v1436_v11 = vpop.eup %1435  ;;  %v595_v34 = vmul.f32 %v579_v23, %v579_v23  ;;  %v1351_v47 = vmul.f32 -1.442695, %v1754_v6 }
  0xbf   :  { %615 = vadd.xlane.f32.xlu2 %v594_v57  ;;  %607 = vadd.xlane.f32.xlu0 %v590_v52  ;;  %1443 = vpow2.f32 %v1358_v2  ;;  %v1438_v15 = vpop.eup %1437  ;;  %v1766_v19 = vadd.f32 1.0, %v1436_v11  ;;  %vm304_vm2 = vweird.f32 %v1743_v62  ;;  %v307_v52 = vand.u32 2147483647, %v1708_v40 }
  0xc0   :  { %v227_v63 = vpop.f32.mrf.mxu3  ;;  %v217_v0 = vpop.f32.mrf.mxu2  ;;  %1445 = vpow2.f32 %v1346_v1  ;;  %v300_v24 = vsub.f32 1.0, %v299_v10  ;;  %v1777_v28 = vadd.f32 1.0, %v1438_v15  ;;  %vm1816_vm3 = vmor %vm303_vm1, %vm304_vm2  ;;  %v310_v2 = vor.u32 1.1754944e-38, %v309_v49 }
  0xc1   :  { %v1748_v3 = vadd.f32 %v1679_v18, %v227_v63  ;;  %v1758_v7 = vadd.f32 %v1679_v18, %v217_v0  ;;  %v1440_v16 = vpop.eup %1439  ;;  %v199_v26 = vpop.f32.mrf.mxu0  ;;  %v1835_v10 = vstv %s2914_s0  ;;  %vm308_vm4 = vcmp.eq.f32.partialorder %v307_v52, 8.507059e+37  ;;  %s1640_s0 = smov [#allocation8]  }
  0xc2   :  { %v1784_v37 = vadd.f32 %v1679_v18, %v199_v26  ;;  %v301_v38 = vmul.f32 %v1743_v62, %v300_v24  ;;  %v1787_v43 = vadd.f32 1.0, %v1440_v16  ;;  %v209_v48 = vpop.f32.mrf.mxu1  ;;  %vm423_vm5 = vweird.f32 %v1738_v59  ;;  %s1265_s28 = sshll.u32 %s1640_s0, 4  ;;  %s1266_s28 = int_to_ptr.vmem [resolvable:$true] %s1265_s28 }
  0xc3   :  { %2929 = vst [vmem:[#allocation14_spill] sm:$0xff] %v1748_v3  ;;  %v587_v8 = vsel %vm572_vm0, 0.0, %v1748_v3  ;;  %v1359_v13 = vmul.f32 -1.442695, %v1748_v3  ;;  %v583_v20 = vsel %vm572_vm0, 0.0, %v1758_v7  ;;  %v1810_v60 = vadd.f32 %v1679_v18, %v209_v48 }
  0xc4   :  { %v603_v12 = vmul.f32 %v587_v8, %v587_v8  ;;  %v1775_v27 = vpop.eup %1441  ;;  %v599_v33 = vmul.f32 %v583_v20, %v583_v20  ;;  %v1355_v36 = vmul.f32 -1.442695, %v1758_v7  ;;  %2931 = vst [vmem:[#allocation16_spill] sm:$0xff] %v1784_v37  ;;  %v576_v55 = vsel %vm572_vm0, 0.0, %v1784_v37 }
  0xc5   :  { %1447 = vpow2.f32 %v1359_v13  ;;  %v1444_v35 = vpop.eup %1443  ;;  %v419_v45 = vmul.f32 %v1775_v27, %v1738_v59  ;;  %v302_v56 = vadd.f32 %v1743_v62, %v301_v38  ;;  %2933 = vst [vmem:[#allocation18_spill] sm:$0xff] %v1810_v60  ;;  %v1348_v1 = vmul.f32 -1.442695, %v1784_v37 }
  0xc6   :  { %609 = vadd.xlane.f32.xlu1 %v591_v4  ;;  %1449 = vrcp.f32 %v1766_v19  ;;  %v1446_v39 = vpop.eup %1445  ;;  %v1798_v50 = vadd.f32 1.0, %v1444_v35  ;;  %v592_v8 = vmul.f32 %v576_v55, %v576_v55  ;;  %v580_v35 = vsel %vm572_vm0, 0.0, %v1810_v60 }
  0xc7   :  { %633 = vadd.xlane.f32.xlu2 %v603_v12  ;;  %623 = vadd.xlane.f32.xlu0 %v598_v14  ;;  %1451 = vpow2.f32 %v1354_v25  ;;  %v1801_v54 = vadd.f32 1.0, %v1446_v39  ;;  %v420_v63 = vsub.f32 1.0, %v419_v45  ;;  %v306_v12 = vsel %vm1816_vm3, %v1743_v62, %v302_v56 }
  0xc8   :  { %v229_v29 = vpop.f32.mrf.mxu3  ;;  %1453 = vrcp.f32 %v1777_v28  ;;  %v219_v11 = vpop.f32.mrf.mxu2  ;;  %v1352_v14 = vmul.f32 -1.442695, %v1810_v60  ;;  %v367_v25 = vand.u32 2147483647, %v1777_v28  ;;  %vm424_vm6 = vweird.f32 %v1775_v27 }
  0xc9   :  { %v1790_v44 = vadd.f32 %v1679_v18, %v229_v29  ;;  %1455 = vpow2.f32 %v1347_v32  ;;  %v421_v15 = vmul.f32 %v1775_v27, %v420_v63  ;;  %v1851_v62 = vadd.f32 %v1679_v18, %v219_v11  ;;  %vm1886_vm7 = vmor %vm423_vm5, %vm424_vm6 }
  0xca   :  { %1457 = vpow2.f32 %v1355_v36  ;;  %v311_v29 = vsel %vm308_vm4, %v310_v2, %v306_v12  ;;  %v427_v48 = vand.u32 2147483647, %v1738_v59  ;;  %v429_v49 = vand.u32 2147483648, %v1738_v59 }
  0xcb   :  { %2932 = vst [vmem:[#allocation17_spill] sm:$0xff] %v1790_v44  ;;  %v1448_v53 = vpop.eup %1447  ;;  %1459 = vrcp.f32 %v1787_v43  ;;  %v1360_v57 = vmul.f32 -1.442695, %v1790_v44  ;;  %v588_v40 = vsel %vm572_vm0, 0.0, %v1790_v44  ;;  %v422_v18 = vadd.f32 %v1775_v27, %v421_v15 }
  0xcc   :  { %v1820_v0 = vpop.eup %1449  ;;  %1461 = vpow2.f32 %v1351_v47  ;;  %v1824_v5 = vadd.f32 1.0, %v1448_v53  ;;  %v604_v24 = vmul.f32 %v588_v40, %v588_v40  ;;  %2936 = vst [vmem:[#allocation19_spill] sm:$0xff] %v1851_v62  ;;  %v540_v47 = vmul.f32 %v1835_v10, %v311_v29 }
  0xcd   :  { %v1452_v4 = vpop.eup %1451  ;;  %1463 = vrcp.f32 %v1798_v50  ;;  %v374_v16 = vmul.f32 %v1820_v0, %v1766_v19  ;;  %v1356_v56 = vmul.f32 -1.442695, %v1851_v62  ;;  %v426_v40 = vsel %vm1886_vm7, %v1775_v27, %v422_v18 }
  0xce   :  { %625 = vadd.xlane.f32.xlu1 %v599_v33  ;;  %v1829_v9 = vpop.eup %1453  ;;  %1465 = vrcp.f32 %v1801_v54  ;;  %v1844_v23 = vadd.f32 1.0, %v1452_v4  ;;  %v504_v33 = vand.u32 2147483648, %v1798_v50  ;;  %v519_v55 = vand.u32 2147483648, %v1824_v5 }
  0xcf   :  { %617 = vadd.xlane.f32.xlu0 %v595_v34  ;;  %v1456_v13 = vpop.eup %1455  ;;  %1467 = vpow2.f32 %v1360_v57  ;;  %v375_v39 = vsub.f32 1.0, %v374_v16  ;;  %v596_v57 = vmul.f32 %v580_v35, %v580_v35  ;;  %v359_v12 = vmul.f32 %v1829_v9, %v1777_v28 }
  0xd0   :  { %v1458_v20 = vpop.eup %1457  ;;  %1469 = vpow2.f32 %v1348_v1  ;;  %v1855_v34 = vadd.f32 1.0, %v1456_v13  ;;  %v1877_v1 = vor.u32 1.1754944e-38, %v504_v33  ;;  %vm363_vm8 = vweird.f32 %v1777_v28 }
  0xd1   :  { %v1847_v26 = vpop.eup %1459  ;;  %1471 = vrcp.f32 %v1824_v5  ;;  %v1863_v38 = vadd.f32 1.0, %v1458_v20  ;;  %v376_v11 = vmul.f32 %v1820_v0, %v375_v39  ;;  %v430_v15 = vor.u32 1.1754944e-38, %v429_v49 }
  0xd2   :  { %v1462_v32 = vpop.eup %1461  ;;  %1473 = vpow2.f32 %v1352_v14  ;;  %v556_v14 = vadd.f32 1.1, %v540_v47  ;;  %v1903_v20 = vor.u32 1.1754944e-38, %v519_v55  ;;  %vm428_vm9 = vcmp.eq.f32.partialorder %v427_v48, 8.507059e+37 }
  0xd3   :  { %v1861_v36 = vpop.eup %1463  ;;  %1475 = vrcp.f32 %v1844_v23  ;;  %v1880_v2 = vadd.f32 1.0, %v1462_v32  ;;  %v431_v33 = vsel %vm428_vm9, %v430_v15, %v426_v40  ;;  %v377_v35 = vadd.f32 %v1820_v0, %v376_v11 }
  0xd4   :  { %v1866_v45 = vpop.eup %1465  ;;  %v494_v63 = vmul.f32 %v1861_v36, %v1798_v50  ;;  %1477 = vrcp.f32 %v1855_v34  ;;  %vm379_vm10 = vweird.f32 %v1820_v0  ;;  %v382_v18 = vand.u32 2147483647, %v1766_v19 }
  0xd5   :  { %v1468_v52 = vpop.eup %1467  ;;  %1479 = vrcp.f32 %v1863_v38  ;;  %v360_v39 = vsub.f32 1.0, %v359_v12  ;;  %vm378_vm11 = vweird.f32 %v1766_v19  ;;  %v384_v49 = vand.u32 2147483648, %v1766_v19 }
  0xd6   :  { %611 = vadd.xlane.f32.xlu1 %v592_v8  ;;  %v1470_v61 = vpop.eup %1469  ;;  %v1901_v13 = vadd.f32 1.0, %v1468_v52  ;;  %1481 = vpow2.f32 %v1356_v56  ;;  %v495_v29 = vsub.f32 1.0, %v494_v63  ;;  %vm364_vm12 = vweird.f32 %v1829_v9  ;;  %vm1933_vm13 = vmor %vm378_vm11, %vm379_vm10 }
  0xd7   :  { %635 = vadd.xlane.f32.xlu0 %v604_v24  ;;  %v1890_v8 = vpop.eup %1471  ;;  %v1905_v24 = vadd.f32 1.0, %v1470_v61  ;;  %1483 = vrcp.f32 %v1880_v2  ;;  %v361_v55 = vmul.f32 %v1829_v9, %v360_v39  ;;  %v369_v56 = vand.u32 2147483648, %v1777_v28  ;;  %vm1952_vm1 = vmor %vm363_vm8, %vm364_vm12 }
  0xd8   :  { %v1474_v16 = vpop.eup %1473  ;;  %v509_v32 = vmul.f32 %v1890_v8, %v1824_v5  ;;  %1485 = vrcp.f32 %v1901_v13  ;;  %v496_v61 = vmul.f32 %v1861_v36, %v495_v29  ;;  %v653_v4 = vmul.f32 %v556_v14, %v556_v14 }
  0xd9   :  { %v1907_v27 = vpop.eup %1475  ;;  %v1918_v48 = vadd.f32 1.0, %v1474_v16  ;;  %v548_v40 = vmul.f32 %v1835_v10, %v431_v33  ;;  %v381_v12 = vsel %vm1933_vm13, %v1820_v0, %v377_v35  ;;  %vm1940_vm14 = vcmp.eq.f32.partialorder %v382_v18, 8.507059e+37 }
  0xda   :  { %v1915_v47 = vpop.eup %1477  ;;  %v510_v63 = vsub.f32 1.0, %v509_v32  ;;  %v362_v16 = vadd.f32 %v1829_v9, %v361_v55  ;;  %vm499_vm15 = vweird.f32 %v1861_v36  ;;  %v385_v32 = vor.u32 1.1754944e-38, %v384_v49 }
  0xdb   :  { %v1922_v52 = vpop.eup %1479  ;;  %vm318_vm2 = vweird.f32 %v1801_v54  ;;  %v324_v0 = vand.u32 2147483648, %v1801_v54  ;;  %v370_v39 = vor.u32 1.1754944e-38, %v369_v56  ;;  %vm319_vm3 = vweird.f32 %v1866_v45 }
  0xdc   :  { %v1482_v11 = vpop.eup %1481  ;;  %v449_v35 = vmul.f32 %v1922_v52, %v1863_v38  ;;  %v366_v18 = vsel %vm1952_vm1, %v1829_v9, %v362_v16  ;;  %vm498_vm4 = vweird.f32 %v1798_v50  ;;  %1487 = vrcp.f32 %v1918_v48  ;;  %vm1982_vm7 = vmor %vm318_vm2, %vm319_vm3 }
  0xdd   :  { %v1945_v29 = vpop.eup %1483  ;;  %v386_v19 = vsel %vm1940_vm14, %v385_v32, %v381_v12  ;;  %vm368_vm5 = vcmp.eq.f32.partialorder %v367_v25, 8.507059e+37  ;;  %v511_v9 = vmul.f32 %v1890_v8, %v510_v63  ;;  %vm513_vm6 = vweird.f32 %v1824_v5  ;;  %vm2027_vm1 = vmor %vm498_vm4, %vm499_vm15 }
  0xde   :  { %619 = vadd.xlane.f32.xlu1 %v596_v57  ;;  %v314_v57 = vmul.f32 %v1866_v45, %v1801_v54  ;;  %v1965_v55 = vpop.eup %1485  ;;  %v371_v56 = vsel %vm368_vm5, %v370_v39, %v366_v18  ;;  %1489 = vrcp.f32 %v1905_v24  ;;  %v564_v33 = vadd.f32 1.1, %v548_v40 }
  0xdf   :  { %1151 = vperm.xlu2 %1425, %v556_v14   ;;  %v325_v28 = vor.u32 1.1754944e-38, %v324_v0  ;;  %v450_v25 = vsub.f32 1.0, %v449_v35  ;;  %v524_v63 = vmul.f32 %v1965_v55, %v1901_v13  ;;  %v545_v12 = vmul.f32 %v1835_v10, %v386_v19 }
  0xe0   :  { %v315_v14 = vsub.f32 1.0, %v314_v57  ;;  %v1969_v57 = vadd.f32 1.0, %v1482_v11  ;;  %v329_v40 = vmul.f32 %v1915_v47, %v1855_v34  ;;  %vm514_vm8 = vweird.f32 %v1890_v8 }
  0xe1   :  { %v544_v32 = vmul.f32 %v1835_v10, %v371_v56  ;;  %v2000_v0 = vadd.f32 %v1861_v36, %v496_v61  ;;  %v2003_v35 = vadd.f32 %v1890_v8, %v511_v9  ;;  %vm333_vm10 = vweird.f32 %v1855_v34  ;;  %vm2040_vm2 = vmor %vm513_vm6, %vm514_vm8 }
  0xe2   :  { %v316_v49 = vmul.f32 %v1866_v45, %v315_v14  ;;  %v322_v14 = vand.u32 2147483647, %v1801_v54  ;;  %1491 = vrcp.f32 %v1969_v57  ;;  %v1996_v54 = vadd.f32 -1.0, %v653_v4  ;;  %v2005_v18 = vpop.eup %1487 }
  0xe3   :  { %vm334_vm11 = vweird.f32 %v1915_v47  ;;  %v525_v4 = vsub.f32 1.0, %v524_v63  ;;  %v2010_v19 = vadd.f32 1.1, %v545_v12  ;;  %vm453_vm12 = vweird.f32 %v1863_v38 }
  0xe4   :  { %v317_v16 = vadd.f32 %v1866_v45, %v316_v49  ;;  %vm323_vm9 = vcmp.eq.f32.partialorder %v322_v14, 8.507059e+37  ;;  %v451_v49 = vmul.f32 %v1922_v52, %v450_v25  ;;  %v2014_v9 = vpop.eup %1489  ;;  %v560_v56 = vadd.f32 1.1, %v544_v32  ;;  %vm2017_vm14 = vmor %vm333_vm10, %vm334_vm11 }
  0xe5   :  { %vm454_vm13 = vweird.f32 %v1922_v52  ;;  %v337_v14 = vand.u32 2147483647, %v1855_v34  ;;  %v339_v11 = vand.u32 2147483648, %v1855_v34  ;;  %v459_v63 = vand.u32 2147483648, %v1863_v38 }
  0xe6   :  { %v321_v15 = vsel %vm1982_vm7, %v1866_v45, %v317_v16  ;;  %v330_v45 = vsub.f32 1.0, %v329_v40  ;;  %v452_v32 = vadd.f32 %v1922_v52, %v451_v49  ;;  %v526_v59 = vmul.f32 %v1965_v55, %v525_v4  ;;  %vm2056_vm3 = vmor %vm453_vm12, %vm454_vm13 }
  0xe7   :  { %v326_v39 = vsel %vm323_vm9, %v325_v28, %v321_v15  ;;  %v404_v15 = vmul.f32 %v2005_v18, %v1918_v48  ;;  %vm338_vm15 = vcmp.eq.f32.partialorder %v337_v14, 8.507059e+37  ;;  %v2070_v60 = vmul.f32 %v564_v33, %v564_v33 }
  0xe8   :  { %v331_v61 = vmul.f32 %v1915_v47, %v330_v45  ;;  %v541_v25 = vmul.f32 %v1835_v10, %v326_v39  ;;  %v1492_v40 = vpop.eup %1491  ;;  %v457_v45 = vand.u32 2147483647, %v1863_v38  ;;  %v340_v39 = vor.u32 1.1754944e-38, %v339_v11 }
  0xe9   :  { %v657_v11 = vmul.f32 %v560_v56, %v560_v56  ;;  %v405_v3 = vsub.f32 1.0, %v404_v15  ;;  %v464_v44 = vmul.f32 %v1492_v40, %v1969_v57  ;;  %vm468_vm5 = vweird.f32 %v1969_v57 }
  0xea   :  { %v332_v12 = vadd.f32 %v1915_v47, %v331_v61  ;;  %v557_v38 = vadd.f32 1.1, %v541_v25  ;;  %v460_v61 = vor.u32 1.1754944e-38, %v459_v63  ;;  %vm458_vm4 = vcmp.eq.f32.partialorder %v457_v45, 8.507059e+37 }
  0xeb   :  { %1191 = vperm.xlu0 %1427, %v564_v33   ;;  %v465_v14 = vsub.f32 1.0, %v464_v44  ;;  %vm469_vm6 = vweird.f32 %v1492_v40  ;;  %v2080_v25 = vadd.f32 -1.0, %v657_v11  ;;  %v472_v33 = vand.u32 2147483647, %v1969_v57 }
  0xec   :  { %v336_v49 = vsel %vm2017_vm14, %v1915_v47, %v332_v12  ;;  %v456_v47 = vsel %vm2056_vm3, %v1922_v52, %v452_v32  ;;  %v2077_v12 = vadd.f32 %v1965_v55, %v526_v59  ;;  %v474_v63 = vand.u32 2147483648, %v1969_v57  ;;  %vm2091_vm9 = vmor %vm468_vm5, %vm469_vm6 }
  0xed   :  { %v341_v53 = vsel %vm338_vm15, %v340_v39, %v336_v49  ;;  %v479_v46 = vmul.f32 %v1847_v26, %v1787_v43  ;;  %vm529_vm7 = vweird.f32 %v1965_v55  ;;  %v461_v52 = vsel %vm458_vm4, %v460_v61, %v456_v47 }
  0xee   :  { %v542_v16 = vmul.f32 %v1835_v10, %v341_v53  ;;  %v654_v53 = vmul.f32 %v557_v38, %v557_v38  ;;  %v406_v59 = vmul.f32 %v2005_v18, %v405_v3  ;;  %v466_v44 = vmul.f32 %v1492_v40, %v465_v14 }
  0xef   :  { %vm408_vm8 = vweird.f32 %v1918_v48  ;;  %v475_v32 = vor.u32 1.1754944e-38, %v474_v63  ;;  %v480_v57 = vsub.f32 1.0, %v479_v46  ;;  %vm528_vm10 = vweird.f32 %v1901_v13 }
  0xf0   :  { %v2088_v15 = vadd.f32 1.1, %v542_v16  ;;  %vm409_vm11 = vweird.f32 %v2005_v18  ;;  %v467_v45 = vadd.f32 %v1492_v40, %v466_v44  ;;  %vm473_vm12 = vcmp.eq.f32.partialorder %v472_v33, 8.507059e+37 }
  0xf1   :  { %v487_v39 = vand.u32 2147483647, %v1787_v43  ;;  %v481_v3 = vmul.f32 %v1847_v26, %v480_v57  ;;  %vm484_vm13 = vweird.f32 %v1847_v26  ;;  %v489_v61 = vand.u32 2147483648, %v1787_v43  ;;  %vm2129_vm6 = vmor %vm408_vm8, %vm409_vm11 }
  0xf2   :  { %v434_v49 = vmul.f32 %v1907_v27, %v1844_v23  ;;  %v407_v14 = vadd.f32 %v2005_v18, %v406_v59  ;;  %v412_v11 = vand.u32 2147483647, %v1918_v48  ;;  %v414_v47 = vand.u32 2147483648, %v1918_v48 }
  0xf3   :  { %1176 = vperm.xlu0 %1427, %v2010_v19   ;;  %v471_v16 = vsel %vm2091_vm9, %v1492_v40, %v467_v45  ;;  %v482_v63 = vadd.f32 %v1847_v26, %v481_v3  ;;  %vm483_vm14 = vweird.f32 %v1787_v43  ;;  %v2957_v44 = vand.u32 2147483647, %v1798_v50 }
  0xf4   :  { %v476_v33 = vsel %vm473_vm12, %v475_v32, %v471_v16  ;;  %v435_v46 = vsub.f32 1.0, %v434_v49  ;;  %v2960_v59 = vand.u32 2147483647, %v1824_v5  ;;  %vm485_vm4 = vmor %vm483_vm14, %vm484_vm13  ;;  %vm488_vm5 = vcmp.eq.f32.partialorder %v487_v39, 8.507059e+37 }
  0xf5   :  { %vm2113_vm15 = vcmp.eq.f32.partialorder %v2957_v44, 8.507059e+37  ;;  %v551_v40 = vmul.f32 %v1835_v10, %v476_v33  ;;  %v444_v43 = vand.u32 2147483648, %v1844_v23  ;;  %v486_v5 = vsel %vm485_vm4, %v1847_v26, %v482_v63  ;;  %vm2159_vm13 = vmor %vm528_vm10, %vm529_vm7 }
  0xf6   :  { %vm2119_vm3 = vcmp.eq.f32.partialorder %v2960_v59, 8.507059e+37  ;;  %v436_v32 = vmul.f32 %v1907_v27, %v435_v46  ;;  %vm439_vm9 = vweird.f32 %v1907_v27  ;;  %v442_v45 = vand.u32 2147483647, %v1844_v23 }
  0xf7   :  { %1171 = vperm.xlu1 %1426, %v560_v56   ;;  %v490_v56 = vor.u32 1.1754944e-38, %v489_v61  ;;  %v2137_v39 = vadd.f32 -1.0, %v654_v53  ;;  %v584_v48 = vsel %vm572_vm0, 0.0, %v1851_v62  ;;  %v2143_v61 = vadd.f32 1.1, %v551_v40 }
  0xf8   :  { %v437_v26 = vadd.f32 %v1907_v27, %v436_v32  ;;  %vm438_vm8 = vweird.f32 %v1844_v23  ;;  %v411_v53 = vsel %vm2129_vm6, %v2005_v18, %v407_v14  ;;  %vm2151_vm11 = vcmp.eq.f32.partialorder %v412_v11, 8.507059e+37 }
  0xf9   :  { %v491_v3 = vsel %vm488_vm5, %v490_v56, %v486_v5  ;;  %vm440_vm12 = vmor %vm438_vm8, %vm439_vm9  ;;  %v445_v33 = vor.u32 1.1754944e-38, %v444_v43  ;;  %vm443_vm14 = vcmp.eq.f32.partialorder %v442_v45, 8.507059e+37  ;;  %1493 = vrsqrt.f32 %v1996_v54 }
  0xfa   :  { %v552_v49 = vmul.f32 %v1835_v10, %v491_v3  ;;  %v441_v18 = vsel %vm440_vm12, %v1907_v27, %v437_v26  ;;  %v531_v14 = vsel %vm2159_vm13, %v1965_v55, %v2077_v12  ;;  %v2173_v11 = vadd.f32 -1.0, %v2070_v60 }
  0xfb   :  { %1161 = vperm.xlu0 %1427, %v2088_v15   ;;  %v446_v46 = vsel %vm443_vm14, %v445_v33, %v441_v18  ;;  %v389_v27 = vmul.f32 %v1945_v29, %v1880_v2  ;;  %1495 = vrsqrt.f32 %v2080_v25  ;;  %v2969_v40 = vand.u32 2147483648, %v1901_v13 }
  0xfc   :  { %v2164_v23 = vadd.f32 1.1, %v552_v49  ;;  %v549_v59 = vmul.f32 %v1835_v10, %v446_v46  ;;  %v600_v55 = vmul.f32 %v584_v48, %v584_v48  ;;  %1497 = vrsqrt.f32 %v2137_v39 }
  0xfd   :  { %v535_v56 = vor.u32 1.1754944e-38, %v2969_v40  ;;  %v2970_v12 = vsel %vm2027_vm1, %v1861_v36, %v2000_v0  ;;  %v2971_v50 = vsel %vm2040_vm2, %v1890_v8, %v2003_v35  ;;  %v2972_v32 = vand.u32 2147483647, %v1901_v13 }
  0xfe   :  { %v665_v44 = vmul.f32 %v2164_v23, %v2164_v23  ;;  %v506_v43 = vsel %vm2113_vm15, %v1877_v1, %v2970_v12  ;;  %v521_v5 = vsel %vm2119_vm3, %v1903_v20, %v2971_v50  ;;  %v2207_v28 = vadd.f32 1.1, %v549_v59 }
  0xff   :  { %1156 = vperm.xlu1 %1426, %v557_v38   ;;  %v550_v38 = vmul.f32 %v1835_v10, %v461_v52  ;;  %v415_v52 = vor.u32 1.1754944e-38, %v414_v47  ;;  %vm533_vm7 = vcmp.eq.f32.partialorder %v2972_v32, 8.507059e+37  ;;  %v2211_v1 = vpop.eup %1493  ;;  %v390_v35 = vsub.f32 1.0, %v389_v27 }
 0x100   :  { %v536_v36 = vsel %vm533_vm7, %v535_v56, %v531_v14  ;;  %v2209_v0 = vadd.f32 -1.0, %v665_v44  ;;  %v662_v8 = vmul.f32 %v2207_v28, %v2207_v28  ;;  %1499 = vrsqrt.f32 %v2173_v11 }
 0x101   :  { %v2175_v47 = vadd.f32 1.1, %v550_v38  ;;  %v416_v60 = vsel %vm2151_vm11, %v415_v52, %v411_v53  ;;  %v553_v13 = vmul.f32 %v1835_v10, %v506_v43  ;;  %v554_v20 = vmul.f32 %v1835_v10, %v521_v5  ;;  %v2219_v4 = vpop.eup %1495 }
 0x102   :  { %v547_v34 = vmul.f32 %v1835_v10, %v416_v60  ;;  %v2221_v57 = vadd.f32 -1.0, %v662_v8  ;;  %v344_v45 = vmul.f32 %v2014_v9, %v1905_v24  ;;  %v2225_v38 = vpop.eup %1497  ;;  %v555_v48 = vmul.f32 %v1835_v10, %v536_v36 }
 0x103   :  { %1206 = vperm.xlu0 %1427, %v2143_v61   ;;  %v686_v3 = vmul.f32 %v2211_v1, %v1996_v54  ;;  %1501 = vrsqrt.f32 %v2209_v0  ;;  %v391_v26 = vmul.f32 %v1945_v29, %v390_v35  ;;  %v2232_v16 = vadd.f32 1.1, %v553_v13 }
 0x104   :  { %v563_v49 = vadd.f32 1.1, %v547_v34  ;;  %v345_v53 = vsub.f32 1.0, %v344_v45  ;;  %v2234_v52 = vadd.f32 1.1, %v554_v20  ;;  %v734_v33 = vmul.f32 %v2219_v4, %v2080_v25 }
 0x105   :  { %1503 = vrsqrt.f32 %v2221_v57  ;;  %vm393_vm1 = vweird.f32 %v1880_v2  ;;  %vm394_vm2 = vweird.f32 %v1945_v29  ;;  %v698_v14 = vmul.f32 %v2225_v38, %v2137_v39 }
 0x106   :  { %v2239_v63 = vpop.eup %1499  ;;  %v346_v18 = vmul.f32 %v2014_v9, %v345_v53  ;;  %v2246_v46 = vadd.f32 1.1, %v555_v48  ;;  %v658_v44 = vmul.f32 %v2010_v19, %v2010_v19  ;;  %v399_v59 = vand.u32 2147483648, %v1880_v2  ;;  %vm2260_vm3 = vmor %vm393_vm1, %vm394_vm2 }
 0x107   :  { %1201 = vperm.xlu1 %1426, %v2175_v47   ;;  %v687_v27 = vmul.f32 %v2211_v1, %v686_v3  ;;  %v392_v40 = vadd.f32 %v1945_v29, %v391_v26  ;;  %v397_v56 = vand.u32 2147483647, %v1880_v2  ;;  %vm348_vm10 = vweird.f32 %v1905_v24 }
 0x108   :  { %627 = vadd.xlane.f32.xlu2 %v600_v55  ;;  %vm349_vm15 = vweird.f32 %v2014_v9  ;;  %v666_v60 = vmul.f32 %v2232_v16, %v2232_v16  ;;  %v354_v19 = vand.u32 2147483648, %v1905_v24  ;;  %v735_v43 = vmul.f32 %v2219_v4, %v734_v33 }
 0x109   :  { %v2256_v55 = vpop.eup %1501  ;;  %v782_v2 = vmul.f32 %v2239_v63, %v2173_v11  ;;  %v667_v50 = vmul.f32 %v2234_v52, %v2234_v52  ;;  %v347_v5 = vadd.f32 %v2014_v9, %v346_v18  ;;  %v352_v32 = vand.u32 2147483647, %v1905_v24  ;;  %vm2285_vm4 = vmor %vm348_vm10, %vm349_vm15 }
 0x10a   :  { %v699_v36 = vmul.f32 %v2225_v38, %v698_v14  ;;  %v668_v8 = vmul.f32 %v2246_v46, %v2246_v46  ;;  %v2277_v35 = vadd.f32 -1.0, %v658_v44  ;;  %v663_v13 = vmul.f32 %v2175_v47, %v2175_v47 }
 0x10b   :  { %v2273_v34 = vpop.eup %1503  ;;  %v688_v45 = vmul.f32 0.5, %v687_v27  ;;  %v396_v48 = vsel %vm2260_vm3, %v1945_v29, %v392_v40  ;;  %vm2292_vm5 = vcmp.eq.f32.partialorder %v397_v56, 8.507059e+37  ;;  %v400_v26 = vor.u32 1.1754944e-38, %v399_v59 }
 0x10c   :  { %v830_v47 = vmul.f32 %v2256_v55, %v2209_v0  ;;  %v355_v53 = vor.u32 1.1754944e-38, %v354_v19  ;;  %v736_v33 = vmul.f32 0.5, %v735_v43  ;;  %v783_v24 = vmul.f32 %v2239_v63, %v782_v2 }
 0x10d   :  { %v794_v18 = vmul.f32 %v2273_v34, %v2221_v57  ;;  %v655_v14 = vmul.f32 %v2088_v15, %v2088_v15  ;;  %v351_v29 = vsel %vm2285_vm4, %v2014_v9, %v347_v5  ;;  %vm353_vm6 = vcmp.eq.f32.partialorder %v352_v32, 8.507059e+37 }
 0x10e   :  { %v700_v44 = vmul.f32 0.5, %v699_v36  ;;  %v2306_v59 = vadd.f32 -1.0, %v666_v60  ;;  %v689_v27 = vsub.f32 1.5, %v688_v45  ;;  %1505 = vrsqrt.f32 %v2277_v35 }
 0x10f   :  { %1186 = vperm.xlu1 %1426, %v563_v49   ;;  %v2309_v40 = vadd.f32 -1.0, %v667_v50  ;;  %v660_v56 = vmul.f32 %v563_v49, %v563_v49  ;;  %v401_v12 = vsel %vm2292_vm5, %v400_v26, %v396_v48  ;;  %v831_v19 = vmul.f32 %v2256_v55, %v830_v47 }
 0x110   :  { %v356_v15 = vsel %vm353_vm6, %v355_v53, %v351_v29  ;;  %v737_v43 = vsub.f32 1.5, %v736_v33  ;;  %v784_v2 = vmul.f32 0.5, %v783_v24  ;;  %v795_v9 = vmul.f32 %v2273_v34, %v794_v18 }
 0x111   :  { %v2315_v5 = vadd.f32 -1.0, %v668_v8  ;;  %v2317_v60 = vadd.f32 -1.0, %v663_v13  ;;  %v2319_v32 = vadd.f32 -1.0, %v655_v14  ;;  %v701_v36 = vsub.f32 1.5, %v700_v44 }
 0x112   :  { %v546_v50 = vmul.f32 %v1835_v10, %v401_v12  ;;  %v690_v49 = vmul.f32 %v2211_v1, %v689_v27  ;;  %vm692_vm9 = vcmp.eq.f32.partialorder %v1996_v54, inf  ;;  %1507 = vrsqrt.f32 %v2306_v59 }
 0x113   :  { %v2325_v20 = vadd.f32 -1.0, %v660_v56  ;;  %v543_v45 = vmul.f32 %v1835_v10, %v356_v15  ;;  %v695_v8 = vand.u32 2147483648, %v1996_v54  ;;  %v832_v48 = vmul.f32 0.5, %v831_v19 }
 0x114   :  { %v2329_v13 = vpop.eup %1505  ;;  %vm694_vm8 = vcmp.eq.f32.partialorder %v1996_v54, 0.0  ;;  %v738_v3 = vmul.f32 %v2219_v4, %v737_v43  ;;  %vm740_vm11 = vcmp.eq.f32.partialorder %v2080_v25, inf  ;;  %v785_v1 = vsub.f32 1.5, %v784_v2 }
 0x115   :  { %v796_v26 = vmul.f32 0.5, %v795_v9  ;;  %v743_v47 = vand.u32 2147483648, %v2080_v25  ;;  %v702_v53 = vmul.f32 %v2225_v38, %v701_v36  ;;  %vm704_vm12 = vcmp.eq.f32.partialorder %v2137_v39, inf }
 0x116   :  { %v746_v10 = vmul.f32 %v2329_v13, %v2277_v35  ;;  %v2340_v33 = vadd.f32 1.1, %v546_v50  ;;  %v691_v24 = vmul.f32 %v1996_v54, %v690_v49  ;;  %v707_v4 = vand.u32 2147483648, %v2137_v39 }
 0x117   :  { %v791_v18 = vand.u32 2147483648, %v2173_v11  ;;  %v2345_v14 = vadd.f32 1.1, %v543_v45  ;;  %v833_v29 = vsub.f32 1.5, %v832_v48  ;;  %vm742_vm13 = vcmp.eq.f32.partialorder %v2080_v25, 0.0 }
 0x118   :  { %vm706_vm14 = vcmp.eq.f32.partialorder %v2137_v39, 0.0  ;;  %v747_v38 = vmul.f32 %v2329_v13, %v746_v10  ;;  %1509 = vrsqrt.f32 %v2315_v5  ;;  %v739_v56 = vmul.f32 %v2080_v25, %v738_v3 }
 0x119   :  { %v786_v12 = vmul.f32 %v2239_v63, %v785_v1  ;;  %vm788_vm7 = vcmp.eq.f32.partialorder %v2173_v11, inf  ;;  %v797_v19 = vsub.f32 1.5, %v796_v26  ;;  %1511 = vrsqrt.f32 %v2309_v40 }
 0x11a   :  { %v703_v2 = vmul.f32 %v2137_v39, %v702_v53  ;;  %1513 = vrsqrt.f32 %v2319_v32  ;;  %v659_v9 = vmul.f32 %v2340_v33, %v2340_v33  ;;  %v693_v63 = vsel %vm692_vm9, %v1996_v54, %v691_v24 }
 0x11b   :  { %vm836_vm1 = vcmp.eq.f32.partialorder %v2209_v0, inf  ;;  %v748_v36 = vmul.f32 0.5, %v747_v38  ;;  %v656_v50 = vmul.f32 %v2345_v14, %v2345_v14  ;;  %v834_v49 = vmul.f32 %v2256_v55, %v833_v29 }
 0x11c   :  { %v839_v48 = vand.u32 2147483648, %v2209_v0  ;;  %vm790_vm2 = vcmp.eq.f32.partialorder %v2173_v11, 0.0  ;;  %v798_v3 = vmul.f32 %v2273_v34, %v797_v19  ;;  %vm800_vm10 = vcmp.eq.f32.partialorder %v2221_v57, inf }
 0x11d   :  { %v2384_v26 = vsel %vm694_vm8, %v695_v8, %v693_v63  ;;  %vm838_vm15 = vcmp.eq.f32.partialorder %v2209_v0, 0.0  ;;  %v741_v55 = vsel %vm740_vm11, %v2080_v25, %v739_v56  ;;  %v705_v53 = vsel %vm704_vm12, %v2137_v39, %v703_v2 }
 0x11e   :  { %v787_v34 = vmul.f32 %v2173_v11, %v786_v12  ;;  %v2397_v24 = vadd.f32 -1.0, %v659_v9  ;;  %vm802_vm3 = vcmp.eq.f32.partialorder %v2221_v57, 0.0  ;;  %v803_v54 = vand.u32 2147483648, %v2221_v57 }
 0x11f   :  { %v749_v8 = vsub.f32 1.5, %v748_v36  ;;  %v2403_v38 = vadd.f32 -1.0, %v656_v50  ;;  %v2414_v2 = vsel %vm706_vm14, %v707_v4, %v705_v53  ;;  %v799_v9 = vmul.f32 %v2221_v57, %v798_v3 }
 0x120   :  { %1211 = vperm.xlu2 %1425, %v2164_v23   ;;  %v2351_v23 = vpop.eup %1507  ;;  %v789_v25 = vsel %vm788_vm7, %v2173_v11, %v787_v34  ;;  %vm752_vm4 = vcmp.eq.f32.partialorder %v2277_v35, inf  ;;  %vm754_vm5 = vcmp.eq.f32.partialorder %v2277_v35, 0.0  ;;  %vm848_vm12 = vcmp.eq.f32.partialorder %v2306_v59, inf }
 0x121   :  { %v842_v45 = vmul.f32 %v2351_v23, %v2306_v59  ;;  %v2380_v1 = vpop.eup %1509 }
 0x122   :  { %v614_v44 = vpop.xlane.xlu2 %613  ;;  %v606_v27 = vpop.xlane.xlu0 %605  ;;  %v866_v63 = vmul.f32 %v2380_v1, %v2315_v5 }
 0x123   :  { %v2357_v15 = vmax.f32 %v614_v44, 1e-08  ;;  %v2359_v43 = vmax.f32 %v606_v27, 1e-08  ;;  %v2394_v10 = vpop.eup %1511  ;;  %v835_v44 = vmul.f32 %v2209_v0, %v834_v49  ;;  %v843_v56 = vmul.f32 %v2351_v23, %v842_v45 }
 0x124   :  { %v2401_v29 = vpop.eup %1513  ;;  %v750_v45 = vmul.f32 %v2329_v13, %v749_v8  ;;  %v854_v3 = vmul.f32 %v2394_v10, %v2309_v40  ;;  %v801_v13 = vsel %vm800_vm10, %v2221_v57, %v799_v9  ;;  %v867_v8 = vmul.f32 %v2380_v1, %v866_v63 }
 0x125   :  { %1515 = vrsqrt.f32 %v2357_v15  ;;  %v710_v39 = vmul.f32 %v2401_v29, %v2319_v32  ;;  %v837_v53 = vsel %vm836_vm1, %v2209_v0, %v835_v44  ;;  %v844_v34 = vmul.f32 0.5, %v843_v56 }
 0x126   :  { %1517 = vrsqrt.f32 %v2359_v43  ;;  %v2456_v27 = vsel %vm790_vm2, %v791_v18, %v789_v25  ;;  %v2464_v9 = vsel %vm838_vm15, %v839_v48, %v837_v53  ;;  %v751_v63 = vmul.f32 %v2277_v35, %v750_v45 }
 0x127   :  { %1519 = vrsqrt.f32 %v2397_v24  ;;  %v711_v44 = vmul.f32 %v2401_v29, %v710_v39  ;;  %v855_v11 = vmul.f32 %v2394_v10, %v854_v3  ;;  %v2471_v39 = vsel %vm802_vm3, %v803_v54, %v801_v13 }
 0x128   :  { %1196 = vperm.xlu2 %1425, %v2207_v28   ;;  %v2410_v28 = vsel %vm742_vm13, %v743_v47, %v741_v55  ;;  %v845_v56 = vsub.f32 1.5, %v844_v34  ;;  %vm883_vm6 = vweird.f32 %v2359_v43  ;;  %v868_v45 = vmul.f32 0.5, %v867_v8 }
 0x129   :  { %vm923_vm8 = vweird.f32 %v2357_v15  ;;  %v712_v34 = vmul.f32 0.5, %v711_v44  ;;  %v753_v8 = vsel %vm752_vm4, %v2277_v35, %v751_v63  ;;  %vm716_vm3 = vcmp.eq.f32.partialorder %v2319_v32, inf }
 0x12a   :  { %v622_v12 = vpop.xlane.xlu2 %621  ;;  %v630_v19 = vpop.xlane.xlu0 %629  ;;  %vm850_vm4 = vcmp.eq.f32.partialorder %v2306_v59, 0.0 }
 0x12b   :  { %v2419_v36 = vpop.eup %1515  ;;  %v2421_v50 = vmax.f32 %v622_v12, 1e-08  ;;  %v2423_v49 = vmax.f32 %v630_v19, 1e-08 }
 0x12c   :  { %v2431_v47 = vpop.eup %1517  ;;  %v918_v4 = vmul.f32 %v2419_v36, %v2357_v15  ;;  %vm924_vm13 = vweird.f32 %v2419_v36 }
 0x12d   :  { %v878_v55 = vmul.f32 %v2431_v47, %v2359_v43  ;;  %1521 = vrsqrt.f32 %v2421_v50  ;;  %v2473_v62 = vpop.eup %1519  ;;  %vm884_vm9 = vweird.f32 %v2431_v47  ;;  %vm1003_vm14 = vweird.f32 %v2423_v49  ;;  %vm2549_vm7 = vmor %vm923_vm8, %vm924_vm13 }
 0x12e   :  { %v919_v12 = vmul.f32 %v2419_v36, %v918_v4  ;;  %1523 = vrsqrt.f32 %v2423_v49  ;;  %vm2500_vm11 = vmor %vm883_vm6, %vm884_vm9  ;;  %v758_v43 = vmul.f32 %v2473_v62, %v2397_v24  ;;  %vm963_vm1 = vweird.f32 %v2421_v50 }
 0x12f   :  { %v879_v19 = vmul.f32 %v2431_v47, %v878_v55  ;;  %vm718_vm6 = vcmp.eq.f32.partialorder %v2319_v32, 0.0 }
 0x130   :  { %1181 = vperm.xlu2 %1425, %v2340_v33   ;;  %v920_v18 = vmul.f32 0.5, %v919_v12 }
 0x131   :  { %v880_v25 = vmul.f32 0.5, %v879_v19  ;;  %v632_v55 = vpop.xlane.xlu1 %631  ;;  %v2494_v19 = vmul.f32 0.5, %v855_v11 }
 0x132   :  { %v2477_v0 = vmax.f32 %v632_v55, 1e-08  ;;  %v616_v33 = vpop.xlane.xlu2 %615  ;;  %v608_v48 = vpop.xlane.xlu0 %607  ;;  %v921_v55 = vsub.f32 1.5, %v920_v18 }
 0x133   :  { %v2479_v3 = vpop.eup %1521  ;;  %v881_v53 = vsub.f32 1.5, %v880_v25  ;;  %v2482_v57 = vmax.f32 %v616_v33, 1e-08  ;;  %v2484_v54 = vmax.f32 %v608_v48, 1e-08  ;;  %v846_v33 = vmul.f32 %v2351_v23, %v845_v56 }
 0x134   :  { %v2486_v12 = vpop.eup %1523  ;;  %v958_v13 = vmul.f32 %v2479_v3, %v2421_v50  ;;  %1525 = vrsqrt.f32 %v2477_v0  ;;  %v713_v48 = vsub.f32 1.5, %v712_v34  ;;  %v2981_v56 = vand.u32 2147483648, %v2277_v35 }
 0x135   :  { %v998_v25 = vmul.f32 %v2486_v12, %v2423_v49  ;;  %1527 = vrsqrt.f32 %v2482_v57  ;;  %v882_v11 = vmul.f32 %v2431_v47, %v881_v53  ;;  %v922_v6 = vmul.f32 %v2419_v36, %v921_v55 }
 0x136   :  { %v959_v63 = vmul.f32 %v2479_v3, %v958_v13  ;;  %1529 = vrsqrt.f32 %v2484_v54  ;;  %v2526_v53 = vsel %vm754_vm5, %v2981_v56, %v753_v8  ;;  %v869_v13 = vsub.f32 1.5, %v868_v45 }
 0x137   :  { %v999_v18 = vmul.f32 %v2486_v12, %v998_v25  ;;  %v886_v23 = vsel %vm2500_vm11, %v2431_v47, %v882_v11  ;;  %v847_v11 = vmul.f32 %v2306_v59, %v846_v33  ;;  %v759_v35 = vmul.f32 %v2473_v62, %v758_v43 }
 0x138   :  { %1166 = vperm.xlu2 %1425, %v2345_v14   ;;  %v960_v51 = vmul.f32 0.5, %v959_v63  ;;  %v1037_v4 = vmul.f32 %v886_v23, %v2384_v26  ;;  %v857_v8 = vsub.f32 1.5, %v2494_v19  ;;  %v714_v26 = vmul.f32 %v2401_v29, %v713_v48 }
 0x139   :  { %v1000_v25 = vmul.f32 0.5, %v999_v18  ;;  %v610_v34 = vpop.xlane.xlu1 %609  ;;  %1531 = vrsqrt.f32 %v2317_v60  ;;  %vm1004_vm2 = vweird.f32 %v2486_v12  ;;  %v2559_v29 = vmul.f32 %v2380_v1, %v869_v13 }
 0x13a   :  { %v2530_v37 = vpop.eup %1525  ;;  %v2532_v14 = vmax.f32 %v610_v34, 1e-08  ;;  %v634_v44 = vpop.xlane.xlu2 %633  ;;  %1055 = vperm.xlu1 %1426, %v1037_v4   ;;  %v961_v43 = vsub.f32 1.5, %v960_v51  ;;  %v926_v48 = vsel %vm2549_vm7, %v2419_v36, %v922_v6  ;;  %vm964_vm10 = vweird.f32 %v2479_v3  ;;  %vm1005_vm15 = vmor %vm1003_vm14, %vm1004_vm2 }
 0x13b   :  { %v624_v47 = vpop.xlane.xlu0 %623  ;;  %v2537_v45 = vpop.eup %1527  ;;  %v1001_v63 = vsub.f32 1.5, %v1000_v25  ;;  %v2539_v18 = vmax.f32 %v634_v44, 1e-08  ;;  %v1008_v23 = vmul.f32 %v2530_v37, %v2477_v0  ;;  %v715_v13 = vmul.f32 %v2319_v32, %v714_v26  ;;  %vm2612_vm9 = vmor %vm963_vm1, %vm964_vm10 }
 0x13c   :  { %v2543_v55 = vpop.eup %1529  ;;  %v928_v4 = vmul.f32 %v2537_v45, %v2482_v57  ;;  %1533 = vrsqrt.f32 %v2532_v14  ;;  %v2570_v25 = vmax.f32 %v624_v47, 1e-08  ;;  %v849_v6 = vsel %vm848_vm12, %v2306_v59, %v847_v11 }
 0x13d   :  { %v888_v15 = vmul.f32 %v2543_v55, %v2484_v54  ;;  %1535 = vrsqrt.f32 %v2539_v18  ;;  %v1002_v1 = vmul.f32 %v2486_v12, %v1001_v63  ;;  %v1041_v33 = vmul.f32 %v926_v48, %v2410_v28 }
 0x13e   :  { %v929_v56 = vmul.f32 %v2537_v45, %v928_v4  ;;  %1537 = vrsqrt.f32 %v2570_v25  ;;  %v719_v26 = vand.u32 2147483648, %v2319_v32  ;;  %v1009_v4 = vmul.f32 %v2530_v37, %v1008_v23 }
 0x13f   :  { %v889_v51 = vmul.f32 %v2543_v55, %v888_v15  ;;  %v1006_v34 = vsel %vm1005_vm15, %v2486_v12, %v1002_v1  ;;  %v2584_v44 = vpop.eup %1531  ;;  %vm894_vm5 = vweird.f32 %v2543_v55  ;;  %v717_v23 = vsel %vm716_vm3, %v2319_v32, %v715_v13 }
 0x140   :  { %v930_v36 = vmul.f32 0.5, %v929_v56  ;;  %v1049_v63 = vmul.f32 %v1006_v34, %v2464_v9  ;;  %v962_v56 = vmul.f32 %v2479_v3, %v961_v43  ;;  %vm893_vm8 = vweird.f32 %v2484_v54 }
 0x141   :  { %v890_v47 = vmul.f32 0.5, %v889_v51  ;;  %v626_v49 = vpop.xlane.xlu1 %625  ;;  %v760_v51 = vmul.f32 0.5, %v759_v35  ;;  %v1010_v13 = vmul.f32 0.5, %v1009_v4  ;;  %vm933_vm11 = vweird.f32 %v2482_v57  ;;  %vm895_vm12 = vmor %vm893_vm8, %vm894_vm5 }
 0x142   :  { %v2590_v11 = vpop.eup %1533  ;;  %v2594_v12 = vmax.f32 %v626_v49, 1e-08  ;;  %1115 = vperm.xlu0 %1427, %v1049_v63   ;;  %1075 = vperm.xlu1 %1426, %v1041_v33   ;;  %v931_v34 = vsub.f32 1.5, %v930_v36  ;;  %v966_v50 = vsel %vm2612_vm9, %v2479_v3, %v962_v56  ;;  %v2633_v63 = vsel %vm718_vm6, %v719_v26, %v717_v23 }
 0x143   :  { %v618_v15 = vpop.xlane.xlu0 %617  ;;  %v2597_v1 = vpop.eup %1535  ;;  %v891_v9 = vsub.f32 1.5, %v890_v47  ;;  %v898_v28 = vmul.f32 %v2590_v11, %v2532_v14  ;;  %v761_v33 = vsub.f32 1.5, %v760_v51  ;;  %vm1014_vm13 = vweird.f32 %v2530_v37 }
 0x144   :  { %v2601_v48 = vmax.f32 %v618_v15, 1e-08  ;;  %1539 = vrsqrt.f32 %v2594_v12  ;;  %v2620_v47 = vpop.eup %1537  ;;  %v1018_v32 = vmul.f32 %v2597_v1, %v2539_v18  ;;  %vm934_vm14 = vweird.f32 %v2537_v45 }
 0x145   :  { %v899_v35 = vmul.f32 %v2590_v11, %v898_v28  ;;  %v892_v36 = vmul.f32 %v2543_v55, %v891_v9  ;;  %v968_v54 = vmul.f32 %v2620_v47, %v2570_v25  ;;  %v932_v15 = vmul.f32 %v2537_v45, %v931_v34  ;;  %vm2660_vm2 = vmor %vm933_vm11, %vm934_vm14 }
 0x146   :  { %1541 = vrsqrt.f32 %v2601_v48  ;;  %vm1013_vm7 = vweird.f32 %v2477_v0  ;;  %vm903_vm1 = vweird.f32 %v2532_v14  ;;  %v1011_v28 = vsub.f32 1.5, %v1010_v13 }
 0x147   :  { %v896_v49 = vsel %vm895_vm12, %v2543_v55, %v892_v36  ;;  %v900_v9 = vmul.f32 0.5, %v899_v35  ;;  %v969_v3 = vmul.f32 %v2620_v47, %v968_v54  ;;  %v1045_v55 = vmul.f32 %v966_v50, %v2456_v27  ;;  %vm2701_vm11 = vmor %vm1013_vm7, %vm1014_vm13 }
 0x148   :  { %v1038_v4 = vmul.f32 %v896_v49, %v2414_v2  ;;  %v1019_v51 = vmul.f32 %v2597_v1, %v1018_v32  ;;  %v2986_v34 = vand.u32 2147483648, %v2306_v59  ;;  %v762_v59 = vmul.f32 %v2473_v62, %v761_v33 }
 0x149   :  { %v612_v56 = vpop.xlane.xlu1 %611  ;;  %v970_v36 = vmul.f32 0.5, %v969_v3  ;;  %vm973_vm10 = vweird.f32 %v2570_v25  ;;  %vm974_vm15 = vweird.f32 %v2620_v47  ;;  %v901_v50 = vsub.f32 1.5, %v900_v9 }
 0x14a   :  { %v2643_v26 = vpop.eup %1539  ;;  %v2646_v23 = vmax.f32 %v612_v56, 1e-08  ;;  %1060 = vperm.xlu2 %1425, %v1038_v4   ;;  %v2652_v43 = vsel %vm850_vm4, %v2986_v34, %v849_v6  ;;  %1095 = vperm.xlu1 %1426, %v1045_v55   ;;  %v936_v6 = vsel %vm2660_vm2, %v2537_v45, %v932_v15  ;;  %vm904_vm3 = vweird.f32 %v2590_v11  ;;  %vm975_vm4 = vmor %vm973_vm10, %vm974_vm15 }
 0x14b   :  { %v636_v2 = vpop.xlane.xlu0 %635  ;;  %v978_v13 = vmul.f32 %v2643_v26, %v2594_v12  ;;  %v971_v54 = vsub.f32 1.5, %v970_v36  ;;  %v1012_v33 = vmul.f32 %v2530_v37, %v1011_v28  ;;  %v1020_v4 = vmul.f32 0.5, %v1019_v51  ;;  %vm2716_vm13 = vmor %vm903_vm1, %vm904_vm3 }
 0x14c   :  { %v2654_v35 = vpop.eup %1541  ;;  %v2666_v32 = vmax.f32 %v636_v2, 1e-08  ;;  %v1042_v56 = vmul.f32 %v936_v6, %v2526_v53  ;;  %v763_v45 = vmul.f32 %v2397_v24, %v762_v59  ;;  %vm764_vm5 = vcmp.eq.f32.partialorder %v2397_v24, inf }
 0x14d   :  { %v938_v57 = vmul.f32 %v2654_v35, %v2601_v48  ;;  %v979_v49 = vmul.f32 %v2643_v26, %v978_v13  ;;  %v972_v3 = vmul.f32 %v2620_v47, %v971_v54  ;;  %v806_v55 = vmul.f32 %v2584_v44, %v2317_v60 }
 0x14e   :  { %1543 = vrsqrt.f32 %v2666_v32  ;;  %vm1024_vm6 = vweird.f32 %v2597_v1  ;;  %vm943_vm9 = vweird.f32 %v2601_v48  ;;  %vm944_vm8 = vweird.f32 %v2654_v35 }
 0x14f   :  { %v939_v62 = vmul.f32 %v2654_v35, %v938_v57  ;;  %1545 = vrsqrt.f32 %v2646_v23  ;;  %v980_v15 = vmul.f32 0.5, %v979_v49  ;;  %v976_v28 = vsel %vm975_vm4, %v2620_v47, %v972_v3  ;;  %vm2734_vm1 = vmor %vm943_vm9, %vm944_vm8 }
 0x150   :  { %v902_v51 = vmul.f32 %v2590_v11, %v901_v50  ;;  %v1046_v27 = vmul.f32 %v976_v28, %v2471_v39  ;;  %v767_v36 = vand.u32 2147483648, %v2397_v24  ;;  %vm872_vm12 = vcmp.eq.f32.partialorder %v2315_v5, inf }
 0x151   :  { %v940_v9 = vmul.f32 0.5, %v939_v62  ;;  %v620_v53 = vpop.xlane.xlu1 %619  ;;  %vm1023_vm14 = vweird.f32 %v2539_v18  ;;  %vm983_vm7 = vweird.f32 %v2594_v12  ;;  %v765_v39 = vsel %vm764_vm5, %v2397_v24, %v763_v45 }
 0x152   :  { %v2705_v34 = vmax.f32 %v620_v53, 1e-08  ;;  %1080 = vperm.xlu2 %1425, %v1042_v56   ;;  %vm766_vm2 = vcmp.eq.f32.partialorder %v2397_v24, 0.0  ;;  %v807_v13 = vmul.f32 %v2584_v44, %v806_v55  ;;  %vm860_vm10 = vcmp.eq.f32.partialorder %v2309_v40, inf  ;;  %1100 = vperm.xlu0 %1427, %v1046_v27   ;;  %vm2792_vm8 = vmor %vm1023_vm14, %vm1024_vm6 }
 0x153   :  { %v941_v2 = vsub.f32 1.5, %v940_v9  ;;  %v1021_v14 = vsub.f32 1.5, %v1020_v4  ;;  %v981_v57 = vsub.f32 1.5, %v980_v15  ;;  %v1016_v54 = vsel %vm2701_vm11, %v2530_v37, %v1012_v33 }
 0x154   :  { %v2710_v47 = vpop.eup %1543  ;;  %vm984_vm15 = vweird.f32 %v2643_v26  ;;  %v871_v62 = vmul.f32 %v2315_v5, %v2559_v29  ;;  %vm874_vm3 = vcmp.eq.f32.partialorder %v2315_v5, 0.0  ;;  %v808_v48 = vmul.f32 0.5, %v807_v13 }
 0x155   :  { %v2728_v59 = vpop.eup %1545  ;;  %v1028_v50 = vmul.f32 %v2710_v47, %v2666_v32  ;;  %v942_v49 = vmul.f32 %v2654_v35, %v941_v2  ;;  %1547 = vrsqrt.f32 %v2705_v34  ;;  %v906_v3 = vsel %vm2716_vm13, %v2590_v11, %v902_v51  ;;  %vm2773_vm4 = vmor %vm983_vm7, %vm984_vm15 }
 0x156   :  { %v768_v37 = vsel %vm766_vm2, %v767_v36, %v765_v39  ;;  %v908_v33 = vmul.f32 %v2728_v59, %v2646_v23  ;;  %v809_v56 = vsub.f32 1.5, %v808_v48  ;;  %v858_v45 = vmul.f32 %v2394_v10, %v857_v8 }
 0x157   :  { %v1029_v4 = vmul.f32 %v2710_v47, %v1028_v50  ;;  %v946_v29 = vsel %vm2734_vm1, %v2654_v35, %v942_v49  ;;  %v1050_v9 = vmul.f32 %v1016_v54, %v2652_v43  ;;  %v982_v11 = vmul.f32 %v2643_v26, %v981_v57 }
 0x158   :  { %v1043_v55 = vmul.f32 %v946_v29, %v768_v37  ;;  %v810_v24 = vmul.f32 %v2584_v44, %v809_v56  ;;  %v859_v53 = vmul.f32 %v2309_v40, %v858_v45  ;;  %v1022_v28 = vmul.f32 %v2597_v1, %v1021_v14 }
 0x159   :  { %v1030_v15 = vmul.f32 0.5, %v1029_v4  ;;  %1549 = vrsqrt.f32 %v2403_v38  ;;  %vm1034_vm5 = vweird.f32 %v2710_v47  ;;  %v1039_v8 = vmul.f32 %v906_v3, %v2633_v63 }
 0x15a   :  { %1120 = vperm.xlu2 %1425, %v1050_v9   ;;  %1085 = vperm.xlu1 %1426, %v1043_v55   ;;  %vm812_vm9 = vcmp.eq.f32.partialorder %v2317_v60, inf  ;;  %v909_v44 = vmul.f32 %v2728_v59, %v908_v33  ;;  %v873_v43 = vsel %vm872_vm12, %v2315_v5, %v871_v62  ;;  %v811_v12 = vmul.f32 %v2317_v60, %v810_v24 }
 0x15b   :  { %v1031_v19 = vsub.f32 1.5, %v1030_v15  ;;  %v815_v35 = vand.u32 2147483648, %v2317_v60  ;;  %v2786_v51 = vpop.eup %1547  ;;  %vm1033_vm11 = vweird.f32 %v2666_v32  ;;  %1065 = vperm.xlu0 %1427, %v1039_v8   ;;  %vm814_vm12 = vcmp.eq.f32.partialorder %v2317_v60, 0.0 }
 0x15c   :  { %v861_v2 = vsel %vm860_vm10, %v2309_v40, %v859_v53  ;;  %vm1035_vm13 = vmor %vm1033_vm11, %vm1034_vm5  ;;  %v813_v18 = vsel %vm812_vm9, %v2317_v60, %v811_v12  ;;  %v986_v27 = vsel %vm2773_vm4, %v2643_v26, %v982_v11  ;;  %v1026_v32 = vsel %vm2792_vm8, %v2597_v1, %v1022_v28 }
 0x15d   :  { %v1032_v25 = vmul.f32 %v2710_v47, %v1031_v19  ;;  %1551 = vrsqrt.f32 %v2325_v20  ;;  %v2999_v36 = vand.u32 2147483648, %v2315_v5  ;;  %vm862_vm6 = vcmp.eq.f32.partialorder %v2309_v40, 0.0 }
 0x15e   :  { %v910_v13 = vmul.f32 0.5, %v909_v44  ;;  %v948_v26 = vmul.f32 %v2786_v51, %v2705_v34  ;;  %v816_v14 = vsel %vm814_vm12, %v815_v35, %v813_v18  ;;  %v3000_v57 = vand.u32 2147483648, %v2309_v40 }
 0x15f   :  { %v876_v0 = vsel %vm874_vm3, %v2999_v36, %v873_v43  ;;  %v1036_v39 = vsel %vm1035_vm13, %v2710_v47, %v1032_v25  ;;  %v1550_v60 = vpop.eup %1549  ;;  %v1047_v50 = vmul.f32 %v986_v27, %v816_v14  ;;  %v664_v62 = vmul.f32 %v2143_v61, %v2143_v61 }
 0x160   :  { %v864_v1 = vsel %vm862_vm6, %v3000_v57, %v861_v2  ;;  %v1052_v6 = vmul.f32 %v1036_v39, %v876_v0  ;;  %v722_v49 = vmul.f32 %v1550_v60, %v2403_v38  ;;  %v911_v48 = vsub.f32 1.5, %v910_v13 }
 0x161   :  { %v1051_v54 = vmul.f32 %v1026_v32, %v864_v1  ;;  %v949_v4 = vmul.f32 %v2786_v51, %v948_v26  ;;  %vm913_vm14 = vweird.f32 %v2646_v23  ;;  %vm914_vm7 = vweird.f32 %v2728_v59 }
 0x162   :  { %1105 = vperm.xlu2 %1425, %v1047_v50   ;;  %v723_v5 = vmul.f32 %v1550_v60, %v722_v49  ;;  %v2829_v29 = vadd.f32 -1.0, %v664_v62  ;;  %v912_v45 = vmul.f32 %v2728_v59, %v911_v48  ;;  %vm2832_vm2 = vmor %vm913_vm14, %vm914_vm7  ;;  %vm728_vm10 = vcmp.eq.f32.partialorder %v2403_v38, inf }
 0x163   :  { %1125 = vperm.xlu1 %1426, %v1051_v54   ;;  %v1552_v47 = vpop.eup %1551  ;;  %1130 = vperm.xlu0 %1427, %v1052_v6   ;;  %v950_v56 = vmul.f32 0.5, %v949_v4  ;;  %v731_v55 = vand.u32 2147483648, %v2403_v38  ;;  %vm730_vm1 = vcmp.eq.f32.partialorder %v2403_v38, 0.0  ;;  %vm953_vm15 = vweird.f32 %v2705_v34  ;;  %v1152_v34 = vpop.permute.xlu2 %1151 }
 0x164   :  { %v724_v3 = vmul.f32 0.5, %v723_v5  ;;  %v770_v40 = vmul.f32 %v1552_v47, %v2325_v20  ;;  %v916_v53 = vsel %vm2832_vm2, %v2728_v59, %v912_v45  ;;  %1553 = vrsqrt.f32 %v2829_v29  ;;  %v1192_v5 = vpop.permute.xlu0 %1191 }
 0x165   :  { %v951_v24 = vsub.f32 1.5, %v950_v56  ;;  %vm954_vm3 = vweird.f32 %v2786_v51  ;;  %vm776_vm4 = vcmp.eq.f32.partialorder %v2325_v20, inf  ;;  %vm778_vm9 = vcmp.eq.f32.partialorder %v2325_v20, 0.0 }
 0x166   :  { %v725_v37 = vsub.f32 1.5, %v724_v3  ;;  %v771_v33 = vmul.f32 %v1552_v47, %v770_v40  ;;  %vm955_vm5 = vmor %vm953_vm15, %vm954_vm3  ;;  %vm824_vm8 = vcmp.eq.f32.partialorder %v2829_v29, inf  ;;  %v827_v6 = vand.u32 2147483648, %v2829_v29 }
 0x167   :  { %v952_v43 = vmul.f32 %v2786_v51, %v951_v24  ;;  %vm826_vm12 = vcmp.eq.f32.partialorder %v2829_v29, 0.0 }
 0x168   :  { %v726_v15 = vmul.f32 %v1550_v60, %v725_v37  ;;  %v772_v9 = vmul.f32 0.5, %v771_v33 }
 0x169   :  { %v956_v12 = vsel %vm955_vm5, %v2786_v51, %v952_v43  ;;  %v1172_v13 = vpop.permute.xlu1 %1171 }
 0x16a   :  { %v727_v23 = vmul.f32 %v2403_v38, %v726_v15  ;;  %v773_v11 = vsub.f32 1.5, %v772_v9  ;;  %v1554_v59 = vpop.eup %1553 }
 0x16b   :  { %1221 = vperm.xlu0 %1427, %v2234_v52   ;;  %v779_v52 = vand.u32 2147483648, %v2325_v20  ;;  %v818_v35 = vmul.f32 %v1554_v59, %v2829_v29 }
 0x16c   :  { %v729_v28 = vsel %vm728_vm10, %v2403_v38, %v727_v23  ;;  %v774_v10 = vmul.f32 %v1552_v47, %v773_v11  ;;  %v1177_v4 = vpop.permute.xlu0 %1176 }
 0x16d   :  { %v732_v19 = vsel %vm730_vm1, %v731_v55, %v729_v28  ;;  %v819_v2 = vmul.f32 %v1554_v59, %v818_v35 }
 0x16e   :  { %v1040_v8 = vmul.f32 %v916_v53, %v732_v19  ;;  %v775_v44 = vmul.f32 %v2325_v20, %v774_v10 }
 0x16f   :  { %v820_v32 = vmul.f32 0.5, %v819_v2 }
 0x170   :  { %1070 = vperm.xlu2 %1425, %v1040_v8   ;;  %v777_v38 = vsel %vm776_vm4, %v2325_v20, %v775_v44 }
 0x171   :  { %v780_v63 = vsel %vm778_vm9, %v779_v52, %v777_v38  ;;  %v821_v36 = vsub.f32 1.5, %v820_v32  ;;  %v1157_v62 = vpop.permute.xlu1 %1156 }
 0x172   :  { %v1044_v25 = vmul.f32 %v956_v12, %v780_v63  ;;  %v3004_v63 = vld [vmem:[#allocation15_spill] sm:$0xff] }
 0x173   :  { %v822_v60 = vmul.f32 %v1554_v59, %v821_v36 }
 0x174   :  { %v1162_v37 = vpop.permute.xlu0 %1161 }
 0x175   :  { %v823_v51 = vmul.f32 %v2829_v29, %v822_v60 }
 0x177   :  { %v825_v50 = vsel %vm824_vm8, %v2829_v29, %v823_v51 }
 0x178   :  { %1090 = vperm.xlu2 %1425, %v1044_v25   ;;  %v828_v54 = vsel %vm826_vm12, %v827_v6, %v825_v50 }
 0x179   :  { %v1202_v3 = vpop.permute.xlu1 %1201 }
 0x17b   :  { %v628_v18 = vpop.xlane.xlu2 %627 }
 0x17c   :  { %v648_v27 = vmax.f32 %v628_v18, 1e-08  ;;  %v1207_v15 = vpop.permute.xlu0 %1206  ;;  %v3005_v18 = vld [vmem:[#allocation13_spill] sm:$0xff] }
 0x17e   :  { %1555 = vrsqrt.f32 %v648_v27  ;;  %vm993_vm13 = vweird.f32 %v648_v27 }
 0x180   :  { %1226 = vperm.xlu2 %1425, %v2246_v46  }
 0x181   :  { %v1187_v56 = vpop.permute.xlu1 %1186 }
 0x183   :  { %v1212_v0 = vpop.permute.xlu2 %1211 }
 0x184   :  { %v1556_v39 = vpop.eup %1555 }
 0x185   :  { %v988_v20 = vmul.f32 %v1556_v39, %v648_v27  ;;  %vm994_vm11 = vweird.f32 %v1556_v39 }
 0x186   :  { %vm995_vm6 = vmor %vm993_vm13, %vm994_vm11 }
 0x187   :  { %v989_v26 = vmul.f32 %v1556_v39, %v988_v20 }
 0x189   :  { %v990_v14 = vmul.f32 0.5, %v989_v26 }
 0x18b   :  { %v991_v57 = vsub.f32 1.5, %v990_v14  ;;  %v1197_v1 = vpop.permute.xlu2 %1196 }
 0x18d   :  { %v992_v46 = vmul.f32 %v1556_v39, %v991_v57 }
 0x18f   :  { %v996_v49 = vsel %vm995_vm6, %v1556_v39, %v992_v46 }
 0x190   :  { %v1048_v47 = vmul.f32 %v996_v49, %v828_v54  ;;  %v3009_v49 = vld [vmem:[#allocation19_spill] sm:$0xff] }
 0x192   :  { %1110 = vperm.xlu1 %1426, %v1048_v47  }
 0x193   :  { %v1182_v48 = vpop.permute.xlu2 %1181 }
 0x19a   :  { %1216 = vperm.xlu1 %1426, %v2232_v16  }
 0x19b   :  { %v1167_v40 = vpop.permute.xlu2 %1166 }
 0x1a4   :  { %v1061_v33 = vpop.permute.xlu2 %1060 }
 0x1a5   :  { %v1134_v29 = vmul.f32 %v1061_v33, %v1711_v41 }
 0x1a7   :  { %v1230_v45 = vsel %vm572_vm0, %v1157_v62, %v1134_v29  ;;  %v3010_v62 = vld [vmem:[#allocation12_spill] sm:$0xff] }
 0x1a8   :  { %1246 = vst [vmem:[#allocation8 + $0x8] sm:$0xff] %v1230_v45 }
 0x1ac   :  { %v1081_v61 = vpop.permute.xlu2 %1080  ;;  %v1056_v55 = vpop.permute.xlu1 %1055 }
 0x1ad   :  { %v1138_v9 = vmul.f32 %v1081_v61, %v1714_v42  ;;  %v1133_v23 = vmul.f32 %v1056_v55, %v1683_v21 }
 0x1af   :  { %v1234_v16 = vsel %vm572_vm0, %v1177_v4, %v1138_v9  ;;  %v1229_v11 = vsel %vm572_vm0, %v1152_v34, %v1133_v23 }
 0x1b0   :  { %1250 = vst [vmem:[#allocation8 + $0x28] sm:$0xff] %v1234_v16 }
 0x1b1   :  { %1245 = vst [vmem:[#allocation8] sm:$0xff] %v1229_v11 }
 0x1b4   :  { %v1121_v41 = vpop.permute.xlu2 %1120  ;;  %v1116_v24 = vpop.permute.xlu0 %1115 }
 0x1b5   :  { %v1076_v53 = vpop.permute.xlu1 %1075  ;;  %v1145_v28 = vmul.f32 %v1116_v24, %v1699_v31 }
 0x1b6   :  { %v1137_v10 = vmul.f32 %v1076_v53, %v1686_v22 }
 0x1b7   :  { %v1241_v42 = vsel %vm572_vm0, %v1212_v0, %v1145_v28  ;;  %v3006_v0 = vld [vmem:[#allocation18_spill] sm:$0xff] }
 0x1b8   :  { %v1233_v21 = vsel %vm572_vm0, %v1172_v13, %v1137_v10  ;;  %1257 = vst [vmem:[#allocation8 + $0x60] sm:$0xff] %v1241_v42  ;;  %v3007_v13 = vld [vmem:[#allocation17_spill] sm:$0xff] }
 0x1b9   :  { %1249 = vst [vmem:[#allocation8 + $0x20] sm:$0xff] %v1233_v21 }
 0x1bc   :  { %v1106_v19 = vpop.permute.xlu2 %1105 }
 0x1bd   :  { %v1143_v8 = vmul.f32 %v1106_v19, %v1758_v7  ;;  %v1096_v44 = vpop.permute.xlu1 %1095  ;;  %v3003_v7 = vld [vmem:[#allocation16_spill] sm:$0xff] }
 0x1be   :  { %v1141_v43 = vmul.f32 %v1096_v44, %v1696_v30 }
 0x1bf   :  { %v1239_v59 = vsel %vm572_vm0, %v1202_v3, %v1143_v8 }
 0x1c0   :  { %1255 = vst [vmem:[#allocation8 + $0x50] sm:$0xff] %v1239_v59  ;;  %v1237_v22 = vsel %vm572_vm0, %v1192_v5, %v1141_v43 }
 0x1c1   :  { %1253 = vst [vmem:[#allocation8 + $0x40] sm:$0xff] %v1237_v22 }
 0x1c4   :  { %v1101_v31 = vpop.permute.xlu0 %1100 }
 0x1c5   :  { %v1142_v52 = vmul.f32 %v1101_v31, %v1736_v58 }
 0x1c7   :  { %v1238_v38 = vsel %vm572_vm0, %v1197_v1, %v1142_v52  ;;  %v3008_v1 = vld [vmem:[#allocation14_spill] sm:$0xff] }
 0x1c8   :  { %1254 = vst [vmem:[#allocation8 + $0x48] sm:$0xff] %v1238_v38 }
 0x1ca   :  { %v1071_v34 = vpop.permute.xlu2 %1070 }
 0x1cb   :  { %v1136_v12 = vmul.f32 %v1071_v34, %v3003_v7 }
 0x1cc   :  { %v1086_v35 = vpop.permute.xlu1 %1085 }
 0x1cd   :  { %v1232_v30 = vsel %vm572_vm0, %v1167_v40, %v1136_v12  ;;  %v1139_v25 = vmul.f32 %v1086_v35, %v3004_v63  ;;  %v1066_v2 = vpop.permute.xlu0 %1065 }
 0x1ce   :  { %1248 = vst [vmem:[#allocation8 + $0x18] sm:$0xff] %v1232_v30  ;;  %v1135_v27 = vmul.f32 %v1066_v2, %v3005_v18 }
 0x1cf   :  { %v1235_v58 = vsel %vm572_vm0, %v1182_v48, %v1139_v25  ;;  %v1146_v48 = vmul.f32 %v1121_v41, %v3010_v62 }
 0x1d0   :  { %1251 = vst [vmem:[#allocation8 + $0x30] sm:$0xff] %v1235_v58  ;;  %v1231_v32 = vsel %vm572_vm0, %v1162_v37, %v1135_v27 }
 0x1d1   :  { %1247 = vst [vmem:[#allocation8 + $0x10] sm:$0xff] %v1231_v32 }
 0x1d2   :  { %v1091_v36 = vpop.permute.xlu2 %1090 }
 0x1d3   :  { %v1140_v39 = vmul.f32 %v1091_v36, %v3006_v0 }
 0x1d5   :  { %v1236_v60 = vsel %vm572_vm0, %v1187_v56, %v1140_v39  ;;  %v1131_v20 = vpop.permute.xlu0 %1130  ;;  %v1126_v14 = vpop.permute.xlu1 %1125 }
 0x1d6   :  { %1252 = vst [vmem:[#allocation8 + $0x38] sm:$0xff] %v1236_v60  ;;  %v1148_v26 = vmul.f32 %v1131_v20, %v3007_v13  ;;  %v1147_v6 = vmul.f32 %v1126_v14, %v3008_v1 }
 0x1da   :  { %v1227_v51 = vpop.permute.xlu2 %1226 }
 0x1db   :  { %v1244_v57 = vsel %vm572_vm0, %v1227_v51, %v1148_v26 }
 0x1dc   :  { %1260 = vst [vmem:[#allocation8 + $0x78] sm:$0xff] %v1244_v57 }
 0x1dd   :  { %v1222_v50 = vpop.permute.xlu0 %1221 }
 0x1de   :  { %v1243_v46 = vsel %vm572_vm0, %v1222_v50, %v1147_v6 }
 0x1df   :  { %1259 = vst [vmem:[#allocation8 + $0x70] sm:$0xff] %v1243_v46 }
 0x204   :  { %v1111_v54 = vpop.permute.xlu1 %1110 }
 0x205   :  { %v1144_v5 = vmul.f32 %v1111_v54, %v3009_v49 }
 0x207   :  { %v1240_v47 = vsel %vm572_vm0, %v1207_v15, %v1144_v5 }
 0x208   :  { %1256 = vst [vmem:[#allocation8 + $0x58] sm:$0xff] %v1240_v47 }
 0x20c   :  { %v1217_v4 = vpop.permute.xlu1 %1216 }
 0x20d   :  { %v1242_v3 = vsel %vm572_vm0, %v1217_v4, %v1146_v48 }
 0x20e   :  { %1258 = vst [vmem:[#allocation8 + $0x68] sm:$0xff] %v1242_v3 }
 0x20f   :  { %1273 = dma.vmem_to_hbm [thread:$0]  %s1266_s28, 2048, %s1268_s5, [#allocation5], %s1641_s6, %s1641_s6, %s1642_s7  }
 0x210   :  { %1633 = dma.done.wait [#allocation5], 2048  }
 0x211   :  { %1634 = vsyncadd [#allocation5], 4294965248 }
 0x212   :  { %1278 = vsyncpa [#allocation4], 1 }
 0x213   :  { %1279 = vsyncpa [#allocation7], 1 }
 0x214   :  { %1280 = vsyncpa [#allocation5], 1 }

</bundles_post_ra>
